<compile_context>
chip_gen: v5e
topology: v5e:2x2
jax: 0.10.0
libtpu: 0.0.40
codegen_flags: <defaults>
</compile_context>

<pallas_src>
import jax
import jax.numpy as jnp
from jax.experimental import pallas as pl
from jax.experimental.pallas import tpu as pltpu


def _round_up(x, m):
    return (x + m - 1) // m * m


def glpool_kernel(feat_ref, w_ref, b_ref, out_ref):
    # feat_ref: (TILE_B, C*S)  feature tile (bf16 preferred, f32 accepted)
    # w_ref:    (C*S, Kp)      fused pooling*classifier weight (resident)
    # b_ref:    (1, Kp)        f32 classifier bias, zero-padded (resident)
    # out_ref:  (TILE_B, Kp)   f32 logits
    out_ref[...] = (
        jnp.dot(feat_ref[...], w_ref[...], preferred_element_type=jnp.float32)
        + b_ref[...]
    )


def _pick_tile_b(batch, row_bytes, budget_bytes):
    """Largest batch tile whose double-buffered feature slab fits the budget."""
    max_rows = max(8, (budget_bytes // (2 * row_bytes)) // 8 * 8)
    if batch <= max_rows:
        return batch            # single block: full-extent dim is always legal
    tb = max_rows
    while tb > 8 and batch % tb:    # prefer a tile that divides batch (no pad)
        tb -= 8
    return tb


def glpool_forward(feature_nchw, pool_w, cls_w, cls_b,
                   *, vmem_tile_budget_bytes=8 * 1024 * 1024):
    """GLPool head forward (visualize=False path).

    feature_nchw: (B, C, H, W) backbone feature map (bf16 recommended — the op
                  is HBM-bandwidth bound; accumulation is f32 on the MXU).
    pool_w: (C, 1, H, W) depthwise conv weight (groups=C, bias=False).
    cls_w:  (K, C) classifier weight.   cls_b: (K,) classifier bias.
    Returns a dict mirroring GLPool.forward (visualize=False path).
    """
    B, C, H, W = feature_nchw.shape
    K = cls_w.shape[0]
    S = H * W
    CS = C * S
    Kp = _round_up(K, 128)               # lane-dense output / full MXU N tile
    compute_dtype = feature_nchw.dtype

    # --- weight fusion (tiny, weights only; no pass over the feature map) ---
    # W2[c*S + s, k] = pool_w[c, 0, s] * cls_w[k, c]
    pw = pool_w.reshape(C, S).astype(jnp.float32)            # (C, S)
    cw = cls_w.T.astype(jnp.float32)                         # (C, K)
    w_fused = (pw[:, :, None] * cw[:, None, :]).reshape(CS, K)
    w_fused = jnp.pad(w_fused, ((0, 0), (0, Kp - K))).astype(compute_dtype)
    bias = jnp.pad(cls_b.astype(jnp.float32), (0, Kp - K)).reshape(1, Kp)

    # --- feature: contiguous NCHW view, NO transpose ---
    feat2d = feature_nchw.reshape(B, CS)

    # --- batch tiling for the double-buffered HBM->VMEM pipeline ---
    row_bytes = CS * feat2d.dtype.itemsize
    tile_b = _pick_tile_b(B, row_bytes, vmem_tile_budget_bytes)
    Bp = _round_up(B, tile_b)
    if Bp != B:
        feat2d = jnp.pad(feat2d, ((0, Bp - B), (0, 0)))
    grid = (Bp // tile_b,)

    cost = pl.CostEstimate(
        flops=2 * Bp * CS * Kp,
        transcendentals=0,
        bytes_accessed=(Bp * CS * feat2d.dtype.itemsize
                        + CS * Kp * w_fused.dtype.itemsize
                        + Bp * Kp * 4),
    )

    logits_p = pl.pallas_call(
        glpool_kernel,
        out_shape=jax.ShapeDtypeStruct((Bp, Kp), jnp.float32),
        grid=grid,
        in_specs=[
            pl.BlockSpec((tile_b, CS), lambda b: (b, 0)),   # pipelined feature
            pl.BlockSpec((CS, Kp), lambda b: (0, 0)),       # resident weights
            pl.BlockSpec((1, Kp), lambda b: (0, 0)),        # resident bias
        ],
        out_specs=pl.BlockSpec((tile_b, Kp), lambda b: (b, 0)),
        compiler_params=pltpu.CompilerParams(
            dimension_semantics=("parallel",),              # megacore on v7x
        ),
        cost_estimate=cost,
    )(feat2d, w_fused, bias)

    logits = logits_p[:B, :K]
    return {"logits": logits,
            "gradcam_activation": feature_nchw,
            "visualized_features": {}}


if __name__ == "__main__":
    # small shapes: image_size=128 -> 4x4 feature map; resnet18-like C=512
    B, C, H, W, K = 2, 512, 4, 4, 10

    key = jax.random.PRNGKey(0)
    k1, k2, k3, k4 = jax.random.split(key, 4)
    feature_f32 = jax.random.normal(k1, (B, C, H, W), dtype=jnp.float32)
    pool_w = jax.random.normal(k2, (C, 1, H, W), dtype=jnp.float32) * 0.05
    cls_w = jax.random.normal(k3, (K, C), dtype=jnp.float32) * 0.02
    cls_b = jax.random.normal(k4, (K,), dtype=jnp.float32) * 0.01

    # The head is HBM-bandwidth bound: carry the feature in bf16 (f32
    # accumulation happens inside the MXU dot).
    feature = feature_f32.astype(jnp.bfloat16)

    out = glpool_forward(feature, pool_w, cls_w, cls_b)
    logits = jax.block_until_ready(out["logits"])

    # pure-JAX reference of the same forward semantics (same bf16 feature,
    # f32 math for pooling + classifier)
    feat_ref = feature.astype(jnp.float32)
    pooled_ref = jnp.sum(feat_ref * pool_w[:, 0][None, :, :, :], axis=(2, 3))
    logits_ref = pooled_ref @ cls_w.T + cls_b

    assert logits.shape == (B, K)
    max_err = float(jnp.max(jnp.abs(logits - logits_ref)))
    assert jnp.allclose(logits, logits_ref, atol=5e-3, rtol=5e-3), max_err
    print("KERNEL_OK")
</pallas_src>

<mosaic_0001>
module attributes {stable_mosaic.version = 11 : i64} {
  func.func @glpool_kernel(%arg0: i32, %arg1: memref<2x8192xbf16, #tpu.memory_space<vmem>>, %arg2: memref<8192x128xbf16, #tpu.memory_space<vmem>>, %arg3: memref<1x128xf32, #tpu.memory_space<vmem>>, %arg4: memref<2x128xf32, #tpu.memory_space<vmem>>) attributes {dimension_semantics = [#tpu.dimension_semantics<parallel>], iteration_bounds = array<i64: 1>, scalar_prefetch = 0 : i64, scratch_operands = 0 : i64, tpu.core_type = #tpu.core_type<tc>, window_params = [{transform_indices = @transform_0, window_bounds = array<i64: 2, 8192>}, {pipeline_mode = #tpu.pipeline_mode<synchronous>, transform_indices = @transform_1, window_bounds = array<i64: 8192, 128>}, {pipeline_mode = #tpu.pipeline_mode<synchronous>, transform_indices = @transform_2, window_bounds = array<i64: 1, 128>}, {transform_indices = @transform_3, window_bounds = array<i64: 2, 128>}]} {
    %c0 = arith.constant 0 : index
    %c0_0 = arith.constant 0 : index
    %0 = vector.load %arg1[%c0, %c0_0] : memref<2x8192xbf16, #tpu.memory_space<vmem>>, vector<2x8192xbf16>
    %c0_1 = arith.constant 0 : index
    %c0_2 = arith.constant 0 : index
    %1 = vector.load %arg2[%c0_1, %c0_2] : memref<8192x128xbf16, #tpu.memory_space<vmem>>, vector<8192x128xbf16>
    %cst = arith.constant dense<0.000000e+00> : vector<2x128xf32>
    %2 = tpu.matmul %0, %1, %cst {dimension_numbers = #tpu.dot_dimension_numbers<[1], [0], [0], [1], [0, 0, 1, 1], [], []>} : vector<2x8192xbf16>, vector<8192x128xbf16>, vector<2x128xf32> -> vector<2x128xf32>
    %c0_3 = arith.constant 0 : index
    %c0_4 = arith.constant 0 : index
    %3 = vector.load %arg3[%c0_3, %c0_4] : memref<1x128xf32, #tpu.memory_space<vmem>>, vector<1x128xf32>
    %4 = vector.broadcast %3 : vector<1x128xf32> to vector<2x128xf32>
    %5 = arith.addf %2, %4 : vector<2x128xf32>
    %c0_5 = arith.constant 0 : index
    %c0_6 = arith.constant 0 : index
    %6 = vector.load %arg4[%c0_5, %c0_6] : memref<2x128xf32, #tpu.memory_space<vmem>>, vector<2x128xf32>
    tpu.vector_store %arg4[%c0_5, %c0_6], %5 {strides = array<i32>} : memref<2x128xf32, #tpu.memory_space<vmem>>, vector<2x128xf32>,
    return
  }
  func.func @transform_0(%arg0: i32) -> (i32, i32) {
    %c0_i32 = arith.constant 0 : i32
    %c0_i32_0 = arith.constant 0 : i32
    return %arg0, %c0_i32 : i32, i32
  }
  func.func @transform_1(%arg0: i32) -> (i32, i32) {
    %c0_i32 = arith.constant 0 : i32
    %c0_i32_0 = arith.constant 0 : i32
    %c0_i32_1 = arith.constant 0 : i32
    return %c0_i32, %c0_i32_0 : i32, i32
  }
  func.func @transform_2(%arg0: i32) -> (i32, i32) {
    %c0_i32 = arith.constant 0 : i32
    %c0_i32_0 = arith.constant 0 : i32
    %c0_i32_1 = arith.constant 0 : i32
    return %c0_i32, %c0_i32_0 : i32, i32
  }
  func.func @transform_3(%arg0: i32) -> (i32, i32) {
    %c0_i32 = arith.constant 0 : i32
    %c0_i32_0 = arith.constant 0 : i32
    return %arg0, %c0_i32 : i32, i32
  }
}

</mosaic_0001>

<bundles_post_ra>
// kernel: tpu_custom_call.1
= control target key start
LH: loop header
LB: loop body
LE: loop exit
PB: predicated region body
PF: predicated region fallthrough
CT: control target
= control target key end

     0   :  { %8 = vsyncpa [#allocation3], 0  ;;  %s7883_s0 = inlined_call_operand.hbm [shape: bf16[2,8192], index: 0, kind: input, shape index: {}]   ;;  %s7884_s1 = inlined_call_operand.hbm [shape: bf16[8192,128], index: 1, kind: input, shape index: {}]   ;;  %s7885_s2 = inlined_call_operand.hbm [shape: f32[1,128], index: 2, kind: input, shape index: {}]   ;;  %s7886_s3 = inlined_call_operand.hbm [shape: f32[2,128], index: 3, kind: output, shape index: {}]  }
   0x1   :  { %9 = vsyncpa [#allocation6], 0  ;;  %s26_s14 = sshll.u32 %s7884_s1, 4  ;;  %s27_s14 = int_to_ptr.hbm [resolvable:$true] %s26_s14 }
   0x2   :  { %10 = vsyncpa [#allocation4], 0  ;;  %s7830_s15 = smov [#allocation5]   ;;  %s16_s19 = sshll.u32 %s7883_s0, 4  ;;  %s17_s19 = int_to_ptr.hbm [resolvable:$true] %s16_s19 }
   0x3   :  { %s28_s16 = sshll.u32 %s7830_s15, 4  ;;  %s7831_s20 = smov 64   ;;  %s29_s16 = int_to_ptr.vmem [resolvable:$true] %s28_s16 }
   0x4   :  { %s7832_s21 = smov 4   ;;  %s7833_s22 = smov [#allocation2]  }
   0x5   :  { %34 = dma.hbm_to_vmem [thread:$0]  %s27_s14, 65536, %s29_s16, [#allocation6], %s7831_s20, %s7831_s20, %s7832_s21  }
   0x6   :  { %s18_s23 = sshll.u32 %s7833_s22, 4  ;;  %s40_s26 = sshll.u32 %s7885_s2, 4  ;;  %s19_s23 = int_to_ptr.vmem [resolvable:$true] %s18_s23  ;;  %s41_s26 = int_to_ptr.hbm [resolvable:$true] %s40_s26 }
   0x7   :  { %21 = dma.hbm_to_vmem [thread:$0]  %s17_s19, 1024, %s19_s23, [#allocation3]  }
   0x8   :  { %s7834_s1 = smov [#allocation7]  }
   0x9   :  { %s42_s27 = sshll.u32 %s7834_s1, 4  ;;  %s43_s27 = int_to_ptr.vmem [resolvable:$true] %s42_s27 }
   0xa   :  { %45 = dma.hbm_to_vmem [thread:$0]  %s41_s26, 16, %s43_s27, [#allocation6]  }
   0xb   :  { %7824 = dma.done.wait [#allocation3], 1024  }
   0xc   :  { %7825 = vsyncadd [#allocation3], 4294966272 }
   0xd   :  { %7826 = dma.done.wait [#allocation6], 65552  }
   0xe   :  { %7827 = vsyncadd [#allocation6], 4294901744  ;;  %v7216_v0 = vld [vmem:[#allocation5 + $0x38] sm:$0xff]  ;;  %v7215_v4 = vld [vmem:[#allocation5 + $0x30] sm:$0xff]  ;;  %s7835_s0 = smov [#allocation8]   ;;  %s5150_s30 = sshll.u32 %s7886_s3, 4  ;;  %s5151_s30 = int_to_ptr.hbm [resolvable:$true] %s5150_s30 }
   0xf   :  { %v7224_v1 = vld [vmem:[#allocation5 + $0x78] sm:$0xff]  ;;  %4310 = vmatpush.bf16.msra.mxu0 %v7216_v0  ;;  %v7223_v5 = vld [vmem:[#allocation5 + $0x70] sm:$0xff]  ;;  %v7214_v8 = vld [vmem:[#allocation5 + $0x28] sm:$0xff]  ;;  %s5148_s2 = sshll.u32 %s7835_s0, 4  ;;  %s5149_s2 = int_to_ptr.vmem [resolvable:$true] %s5148_s2 }
  0x10   :  { %v7232_v2 = vld [vmem:[#allocation5 + $0xb8] sm:$0xff]  ;;  %4323 = vmatpush.bf16.msra.mxu1 %v7224_v1  ;;  %v7231_v6 = vld [vmem:[#allocation5 + $0xb0] sm:$0xff]  ;;  %v7222_v9 = vld [vmem:[#allocation5 + $0x68] sm:$0xff] }
  0x11   :  { %v7240_v3 = vld [vmem:[#allocation5 + $0xf8] sm:$0xff]  ;;  %4336 = vmatpush.bf16.msra.mxu2 %v7232_v2  ;;  %v7239_v7 = vld [vmem:[#allocation5 + $0xf0] sm:$0xff]  ;;  %v7230_v10 = vld [vmem:[#allocation5 + $0xa8] sm:$0xff] }
  0x12   :  { %4349 = vmatpush.bf16.msra.mxu3 %v7240_v3  ;;  %v7238_v11 = vld [vmem:[#allocation5 + $0xe8] sm:$0xff]  ;;  %v7213_v12 = vld [vmem:[#allocation5 + $0x20] sm:$0xff]  ;;  %v7212_v16 = vld [vmem:[#allocation5 + $0x18] sm:$0xff] }
  0x13   :  { %4311 = vmatpush.bf16.msra.mxu0 %v7215_v4  ;;  %v7221_v13 = vld [vmem:[#allocation5 + $0x60] sm:$0xff]  ;;  %v7220_v17 = vld [vmem:[#allocation5 + $0x58] sm:$0xff]  ;;  %v7211_v21 = vld [vmem:[#allocation5 + $0x10] sm:$0xff] }
  0x14   :  { %4324 = vmatpush.bf16.msra.mxu1 %v7223_v5  ;;  %v7229_v14 = vld [vmem:[#allocation5 + $0xa0] sm:$0xff]  ;;  %v7228_v18 = vld [vmem:[#allocation5 + $0x98] sm:$0xff]  ;;  %v7219_v22 = vld [vmem:[#allocation5 + $0x50] sm:$0xff] }
  0x15   :  { %4337 = vmatpush.bf16.msra.mxu2 %v7231_v6  ;;  %v7237_v15 = vld [vmem:[#allocation5 + $0xe0] sm:$0xff]  ;;  %v7236_v19 = vld [vmem:[#allocation5 + $0xd8] sm:$0xff]  ;;  %v7227_v23 = vld [vmem:[#allocation5 + $0x90] sm:$0xff] }
  0x16   :  { %4350 = vmatpush.bf16.msra.mxu3 %v7239_v7  ;;  %v58_v20 = vld [vmem:[#allocation2] sm:$0xff]  ;;  %v7235_v24 = vld [vmem:[#allocation5 + $0xd0] sm:$0xff]  ;;  %v7210_v25 = vld [vmem:[#allocation5 + $0x8] sm:$0xff] }
  0x17   :  { %4312 = vmatpush.bf16.msra.mxu0 %v7214_v8  ;;  %1095 = vst [vmem:[#allocation1] ss:$9 sm:$0xff] %v58_v20  ;;  %v7218_v26 = vld [vmem:[#allocation5 + $0x48] sm:$0xff]  ;;  %v7209_v29 = vld [vmem:[#allocation5] sm:$0xff]  ;;  %v7248_v33 = vld [vmem:[#allocation5 + $0x138] sm:$0xff] }
  0x18   :  { %4325 = vmatpush.bf16.msra.mxu1 %v7222_v9  ;;  %v7226_v27 = vld [vmem:[#allocation5 + $0x88] sm:$0xff]  ;;  %v7217_v30 = vld [vmem:[#allocation5 + $0x40] sm:$0xff]  ;;  %v7256_v34 = vld [vmem:[#allocation5 + $0x178] sm:$0xff] }
  0x19   :  { %4338 = vmatpush.bf16.msra.mxu2 %v7230_v10  ;;  %v7234_v28 = vld [vmem:[#allocation5 + $0xc8] sm:$0xff]  ;;  %v7225_v31 = vld [vmem:[#allocation5 + $0x80] sm:$0xff]  ;;  %v7264_v35 = vld [vmem:[#allocation5 + $0x1b8] sm:$0xff] }
  0x1a   :  { %4351 = vmatpush.bf16.msra.mxu3 %v7238_v11  ;;  %v7233_v32 = vld [vmem:[#allocation5 + $0xc0] sm:$0xff]  ;;  %v7272_v36 = vld [vmem:[#allocation5 + $0x1f8] sm:$0xff]  ;;  %v7247_v37 = vld [vmem:[#allocation5 + $0x130] sm:$0xff] }
  0x1b   :  { %4313 = vmatpush.bf16.msra.mxu0 %v7213_v12  ;;  %v7255_v40 = vld [vmem:[#allocation5 + $0x170] sm:$0xff]  ;;  %v7246_v45 = vld [vmem:[#allocation5 + $0x128] sm:$0xff]  ;;  %v7245_v49 = vld [vmem:[#allocation5 + $0x120] sm:$0xff] }
  0x1c   :  { %4326 = vmatpush.bf16.msra.mxu1 %v7221_v13  ;;  %v7263_v43 = vld [vmem:[#allocation5 + $0x1b0] sm:$0xff]  ;;  %v7254_v46 = vld [vmem:[#allocation5 + $0x168] sm:$0xff]  ;;  %v7253_v50 = vld [vmem:[#allocation5 + $0x160] sm:$0xff] }
  0x1d   :  { %4339 = vmatpush.bf16.msra.mxu2 %v7229_v14  ;;  %v7271_v44 = vld [vmem:[#allocation5 + $0x1f0] sm:$0xff]  ;;  %v7262_v47 = vld [vmem:[#allocation5 + $0x1a8] sm:$0xff]  ;;  %v7261_v51 = vld [vmem:[#allocation5 + $0x1a0] sm:$0xff] }
  0x1e   :  { %4352 = vmatpush.bf16.msra.mxu3 %v7237_v15  ;;  %v1098_v38 = vld [vmem:[#allocation1 + $0x12] sm:$0xff]  ;;  %v1096_v39 = vld [vmem:[#allocation1] sm:$0xff]  ;;  %v1097_v42 = vld [vmem:[#allocation1 + $0x9] sm:$0xff] }
  0x1f   :  { %4314 = vmatpush.bf16.msra.mxu0 %v7212_v16  ;;  %v1099_v41 = vld [vmem:[#allocation1 + $0x1b] sm:$0xff]  ;;  %v7270_v48 = vld [vmem:[#allocation5 + $0x1e8] sm:$0xff]  ;;  %v7269_v52 = vld [vmem:[#allocation5 + $0x1e0] sm:$0xff] }
  0x20   :  { %4327 = vmatpush.bf16.msra.mxu1 %v7220_v17  ;;  %v7244_v53 = vld [vmem:[#allocation5 + $0x118] sm:$0xff]  ;;  %v7243_v57 = vld [vmem:[#allocation5 + $0x110] sm:$0xff]  ;;  %v7242_v61 = vld [vmem:[#allocation5 + $0x108] sm:$0xff] }
  0x21   :  { %4340 = vmatpush.bf16.msra.mxu2 %v7228_v18  ;;  %v7252_v54 = vld [vmem:[#allocation5 + $0x158] sm:$0xff]  ;;  %v7251_v58 = vld [vmem:[#allocation5 + $0x150] sm:$0xff]  ;;  %v7250_v62 = vld [vmem:[#allocation5 + $0x148] sm:$0xff] }
  0x22   :  { %4353 = vmatpush.bf16.msra.mxu3 %v7236_v19  ;;  %v7260_v55 = vld [vmem:[#allocation5 + $0x198] sm:$0xff]  ;;  %v7259_v59 = vld [vmem:[#allocation5 + $0x190] sm:$0xff]  ;;  %v7258_v63 = vld [vmem:[#allocation5 + $0x188] sm:$0xff] }
  0x23   :  { %4315 = vmatpush.bf16.msra.mxu0 %v7211_v21  ;;  %v7268_v56 = vld [vmem:[#allocation5 + $0x1d8] sm:$0xff]  ;;  %v7267_v60 = vld [vmem:[#allocation5 + $0x1d0] sm:$0xff]  ;;  %v7266_v0 = vld [vmem:[#allocation5 + $0x1c8] sm:$0xff] }
  0x24   :  { %4328 = vmatpush.bf16.msra.mxu1 %v7219_v22  ;;  %v1102_v1 = vld [vmem:[#allocation1 + $0x36] sm:$0xff]  ;;  %v1100_v2 = vld [vmem:[#allocation1 + $0x24] sm:$0xff]  ;;  %v1101_v4 = vld [vmem:[#allocation1 + $0x2d] sm:$0xff] }
  0x25   :  { %4341 = vmatpush.bf16.msra.mxu2 %v7227_v23  ;;  %v1103_v3 = vld [vmem:[#allocation1 + $0x3f] sm:$0xff]  ;;  %v59_v5 = vld [vmem:[#allocation2 + $0x8] sm:$0xff]  ;;  %v7241_v6 = vld [vmem:[#allocation5 + $0x100] sm:$0xff] }
  0x26   :  { %4354 = vmatpush.bf16.msra.mxu3 %v7235_v24  ;;  %1105 = vst [vmem:[#allocation1] ss:$9 sm:$0xff] %v59_v5  ;;  %v7249_v7 = vld [vmem:[#allocation5 + $0x140] sm:$0xff]  ;;  %v7280_v10 = vld [vmem:[#allocation5 + $0x238] sm:$0xff]  ;;  %v7279_v14 = vld [vmem:[#allocation5 + $0x230] sm:$0xff] }
  0x27   :  { %4316 = vmatpush.bf16.msra.mxu0 %v7210_v25  ;;  %v7257_v8 = vld [vmem:[#allocation5 + $0x180] sm:$0xff]  ;;  %v7288_v11 = vld [vmem:[#allocation5 + $0x278] sm:$0xff]  ;;  %v7287_v15 = vld [vmem:[#allocation5 + $0x270] sm:$0xff] }
  0x28   :  { %4329 = vmatpush.bf16.msra.mxu1 %v7218_v26  ;;  %v7265_v9 = vld [vmem:[#allocation5 + $0x1c0] sm:$0xff]  ;;  %v7296_v12 = vld [vmem:[#allocation5 + $0x2b8] sm:$0xff]  ;;  %v7295_v16 = vld [vmem:[#allocation5 + $0x2b0] sm:$0xff] }
  0x29   :  { %4342 = vmatpush.bf16.msra.mxu2 %v7226_v27  ;;  %v7304_v13 = vld [vmem:[#allocation5 + $0x2f8] sm:$0xff]  ;;  %v7303_v17 = vld [vmem:[#allocation5 + $0x2f0] sm:$0xff]  ;;  %v7278_v18 = vld [vmem:[#allocation5 + $0x228] sm:$0xff] }
  0x2a   :  { %4355 = vmatpush.bf16.msra.mxu3 %v7234_v28  ;;  %v7286_v19 = vld [vmem:[#allocation5 + $0x268] sm:$0xff]  ;;  %v7277_v22 = vld [vmem:[#allocation5 + $0x220] sm:$0xff]  ;;  %v7276_v26 = vld [vmem:[#allocation5 + $0x218] sm:$0xff] }
  0x2b   :  { %4317 = vmatpush.bf16.msra.mxu0 %v7209_v29  ;;  %v7294_v20 = vld [vmem:[#allocation5 + $0x2a8] sm:$0xff]  ;;  %v7285_v23 = vld [vmem:[#allocation5 + $0x260] sm:$0xff]  ;;  %v7284_v27 = vld [vmem:[#allocation5 + $0x258] sm:$0xff] }
  0x2c   :  { %4330 = vmatpush.bf16.msra.mxu1 %v7217_v30  ;;  %v7302_v21 = vld [vmem:[#allocation5 + $0x2e8] sm:$0xff]  ;;  %v7293_v24 = vld [vmem:[#allocation5 + $0x2a0] sm:$0xff]  ;;  %v7292_v28 = vld [vmem:[#allocation5 + $0x298] sm:$0xff] }
  0x2d   :  { %4343 = vmatpush.bf16.msra.mxu2 %v7225_v31  ;;  %v7301_v25 = vld [vmem:[#allocation5 + $0x2e0] sm:$0xff]  ;;  %v7300_v29 = vld [vmem:[#allocation5 + $0x2d8] sm:$0xff]  ;;  %v7275_v30 = vld [vmem:[#allocation5 + $0x210] sm:$0xff] }
  0x2e   :  { %4356 = vmatpush.bf16.msra.mxu3 %v7233_v32  ;;  %4318 = vmatmul.bf16.vlgmr.msra.gmra.mxu0 %v1096_v39  ;;  %v7283_v31 = vld [vmem:[#allocation5 + $0x250] sm:$0xff]  ;;  %v7281_v39 = vld [vmem:[#allocation5 + $0x240] sm:$0xff] }
  0x2f   :  { %4362 = vmatpush.bf16.msrb.mxu0 %v7248_v33  ;;  %4331 = vmatmul.bf16.vlgmr.msra.gmra.mxu1 %v1097_v42  ;;  %v7291_v32 = vld [vmem:[#allocation5 + $0x290] sm:$0xff]  ;;  %v7312_v42 = vld [vmem:[#allocation5 + $0x338] sm:$0xff] }
  0x30   :  { %4375 = vmatpush.bf16.msrb.mxu1 %v7256_v34  ;;  %4344 = vmatmul.bf16.vlgmr.msra.gmra.mxu2 %v1098_v38  ;;  %v7299_v33 = vld [vmem:[#allocation5 + $0x2d0] sm:$0xff]  ;;  %v7274_v34 = vld [vmem:[#allocation5 + $0x208] sm:$0xff]  ;;  %v7273_v38 = vld [vmem:[#allocation5 + $0x200] sm:$0xff] }
  0x31   :  { %4388 = vmatpush.bf16.msrb.mxu2 %v7264_v35  ;;  %4357 = vmatmul.bf16.vlgmr.msra.gmra.mxu3 %v1099_v41  ;;  %v7282_v35 = vld [vmem:[#allocation5 + $0x248] sm:$0xff]  ;;  %v7297_v41 = vld [vmem:[#allocation5 + $0x2c0] sm:$0xff]  ;;  %v7331_v5 = vld [vmem:[#allocation5 + $0x3d0] sm:$0xff] }
  0x32   :  { %4401 = vmatpush.bf16.msrb.mxu3 %v7272_v36  ;;  %v7290_v36 = vld [vmem:[#allocation5 + $0x288] sm:$0xff] }
  0x33   :  { %4363 = vmatpush.bf16.msrb.mxu0 %v7247_v37  ;;  %v7298_v37 = vld [vmem:[#allocation5 + $0x2c8] sm:$0xff] }
  0x34   :  { %4376 = vmatpush.bf16.msrb.mxu1 %v7255_v40  ;;  %v7289_v40 = vld [vmem:[#allocation5 + $0x280] sm:$0xff] }
  0x35   :  { %4389 = vmatpush.bf16.msrb.mxu2 %v7263_v43  ;;  %v7320_v43 = vld [vmem:[#allocation5 + $0x378] sm:$0xff] }
  0x36   :  { %4402 = vmatpush.bf16.msrb.mxu3 %v7271_v44  ;;  %v7328_v44 = vld [vmem:[#allocation5 + $0x3b8] sm:$0xff] }
  0x37   :  { %4364 = vmatpush.bf16.msrb.mxu0 %v7246_v45  ;;  %v7336_v45 = vld [vmem:[#allocation5 + $0x3f8] sm:$0xff] }
  0x38   :  { %4377 = vmatpush.bf16.msrb.mxu1 %v7254_v46  ;;  %v1106_v46 = vld [vmem:[#allocation1] sm:$0xff] }
  0x39   :  { %4390 = vmatpush.bf16.msrb.mxu2 %v7262_v47  ;;  %v1108_v47 = vld [vmem:[#allocation1 + $0x12] sm:$0xff] }
  0x3a   :  { %4403 = vmatpush.bf16.msrb.mxu3 %v7270_v48  ;;  %v1107_v48 = vld [vmem:[#allocation1 + $0x9] sm:$0xff] }
  0x3b   :  { %4365 = vmatpush.bf16.msrb.mxu0 %v7245_v49  ;;  %v1109_v49 = vld [vmem:[#allocation1 + $0x1b] sm:$0xff] }
  0x3c   :  { %4378 = vmatpush.bf16.msrb.mxu1 %v7253_v50  ;;  %v7311_v50 = vld [vmem:[#allocation5 + $0x330] sm:$0xff] }
  0x3d   :  { %4391 = vmatpush.bf16.msrb.mxu2 %v7261_v51  ;;  %v7319_v51 = vld [vmem:[#allocation5 + $0x370] sm:$0xff] }
  0x3e   :  { %4404 = vmatpush.bf16.msrb.mxu3 %v7269_v52  ;;  %v7327_v52 = vld [vmem:[#allocation5 + $0x3b0] sm:$0xff] }
  0x3f   :  { %4366 = vmatpush.bf16.msrb.mxu0 %v7244_v53  ;;  %v7335_v53 = vld [vmem:[#allocation5 + $0x3f0] sm:$0xff] }
  0x40   :  { %4379 = vmatpush.bf16.msrb.mxu1 %v7252_v54  ;;  %v7310_v54 = vld [vmem:[#allocation5 + $0x328] sm:$0xff] }
  0x41   :  { %4392 = vmatpush.bf16.msrb.mxu2 %v7260_v55  ;;  %v7318_v55 = vld [vmem:[#allocation5 + $0x368] sm:$0xff] }
  0x42   :  { %4405 = vmatpush.bf16.msrb.mxu3 %v7268_v56  ;;  %v7326_v56 = vld [vmem:[#allocation5 + $0x3a8] sm:$0xff] }
  0x43   :  { %4367 = vmatpush.bf16.msrb.mxu0 %v7243_v57  ;;  %v7334_v57 = vld [vmem:[#allocation5 + $0x3e8] sm:$0xff] }
  0x44   :  { %4380 = vmatpush.bf16.msrb.mxu1 %v7251_v58  ;;  %v7309_v58 = vld [vmem:[#allocation5 + $0x320] sm:$0xff] }
  0x45   :  { %4393 = vmatpush.bf16.msrb.mxu2 %v7259_v59  ;;  %v7317_v59 = vld [vmem:[#allocation5 + $0x360] sm:$0xff] }
  0x46   :  { %4406 = vmatpush.bf16.msrb.mxu3 %v7267_v60  ;;  %v7325_v60 = vld [vmem:[#allocation5 + $0x3a0] sm:$0xff] }
  0x47   :  { %4368 = vmatpush.bf16.msrb.mxu0 %v7242_v61  ;;  %v7333_v61 = vld [vmem:[#allocation5 + $0x3e0] sm:$0xff] }
  0x48   :  { %4381 = vmatpush.bf16.msrb.mxu1 %v7250_v62  ;;  %v7308_v62 = vld [vmem:[#allocation5 + $0x318] sm:$0xff] }
  0x49   :  { %4394 = vmatpush.bf16.msrb.mxu2 %v7258_v63  ;;  %v7316_v63 = vld [vmem:[#allocation5 + $0x358] sm:$0xff] }
  0x4a   :  { %4407 = vmatpush.bf16.msrb.mxu3 %v7266_v0  ;;  %v7324_v0 = vld [vmem:[#allocation5 + $0x398] sm:$0xff] }
  0x4b   :  { %4369 = vmatpush.bf16.msrb.mxu0 %v7241_v6  ;;  %v7306_v6 = vld [vmem:[#allocation5 + $0x308] sm:$0xff] }
  0x4c   :  { %4382 = vmatpush.bf16.msrb.mxu1 %v7249_v7  ;;  %v7314_v7 = vld [vmem:[#allocation5 + $0x348] sm:$0xff] }
  0x4d   :  { %4395 = vmatpush.bf16.msrb.mxu2 %v7257_v8  ;;  %v7322_v8 = vld [vmem:[#allocation5 + $0x388] sm:$0xff] }
  0x4e   :  { %4408 = vmatpush.bf16.msrb.mxu3 %v7265_v9  ;;  %4370 = vmatmul.bf16.vlgmr.msrb.gmra.mxu0 %v1100_v2  ;;  %v7307_v2 = vld [vmem:[#allocation5 + $0x310] sm:$0xff]  ;;  %v7330_v9 = vld [vmem:[#allocation5 + $0x3c8] sm:$0xff] }
  0x4f   :  { %4414 = vmatpush.bf16.msra.mxu0 %v7280_v10  ;;  %4383 = vmatmul.bf16.vlgmr.msrb.gmra.mxu1 %v1101_v4  ;;  %v7323_v4 = vld [vmem:[#allocation5 + $0x390] sm:$0xff]  ;;  %v1110_v10 = vld [vmem:[#allocation1 + $0x24] sm:$0xff] }
  0x50   :  { %4427 = vmatpush.bf16.msra.mxu1 %v7288_v11  ;;  %4396 = vmatmul.bf16.vlgmr.msrb.gmra.mxu2 %v1102_v1  ;;  %v7332_v1 = vld [vmem:[#allocation5 + $0x3d8] sm:$0xff]  ;;  %v1112_v11 = vld [vmem:[#allocation1 + $0x36] sm:$0xff] }
  0x51   :  { %4440 = vmatpush.bf16.msra.mxu2 %v7296_v12  ;;  %4409 = vmatmul.bf16.vlgmr.msrb.gmra.mxu3 %v1103_v3  ;;  %v7315_v3 = vld [vmem:[#allocation5 + $0x350] sm:$0xff]  ;;  %v1111_v12 = vld [vmem:[#allocation1 + $0x2d] sm:$0xff] }
  0x52   :  { %4453 = vmatpush.bf16.msra.mxu3 %v7304_v13  ;;  %v1113_v13 = vld [vmem:[#allocation1 + $0x3f] sm:$0xff] }
  0x53   :  { %4415 = vmatpush.bf16.msra.mxu0 %v7279_v14  ;;  %v60_v14 = vld [vmem:[#allocation2 + $0x10] sm:$0xff] }
  0x54   :  { %4428 = vmatpush.bf16.msra.mxu1 %v7287_v15  ;;  %1115 = vst [vmem:[#allocation1] ss:$9 sm:$0xff] %v60_v14  ;;  %v7305_v15 = vld [vmem:[#allocation5 + $0x300] sm:$0xff]  ;;  %v7388_v14 = vld [vmem:[#allocation5 + $0x598] sm:$0xff] }
  0x55   :  { %4441 = vmatpush.bf16.msra.mxu2 %v7295_v16  ;;  %v7313_v16 = vld [vmem:[#allocation5 + $0x340] sm:$0xff] }
  0x56   :  { %4454 = vmatpush.bf16.msra.mxu3 %v7303_v17  ;;  %v7321_v17 = vld [vmem:[#allocation5 + $0x380] sm:$0xff] }
  0x57   :  { %4416 = vmatpush.bf16.msra.mxu0 %v7278_v18  ;;  %v7329_v18 = vld [vmem:[#allocation5 + $0x3c0] sm:$0xff] }
  0x58   :  { %4429 = vmatpush.bf16.msra.mxu1 %v7286_v19  ;;  %v7344_v19 = vld [vmem:[#allocation5 + $0x438] sm:$0xff] }
  0x59   :  { %4442 = vmatpush.bf16.msra.mxu2 %v7294_v20  ;;  %v7352_v20 = vld [vmem:[#allocation5 + $0x478] sm:$0xff] }
  0x5a   :  { %4455 = vmatpush.bf16.msra.mxu3 %v7302_v21  ;;  %v7360_v21 = vld [vmem:[#allocation5 + $0x4b8] sm:$0xff] }
  0x5b   :  { %4417 = vmatpush.bf16.msra.mxu0 %v7277_v22  ;;  %v7368_v22 = vld [vmem:[#allocation5 + $0x4f8] sm:$0xff] }
  0x5c   :  { %4430 = vmatpush.bf16.msra.mxu1 %v7285_v23  ;;  %v7343_v23 = vld [vmem:[#allocation5 + $0x430] sm:$0xff] }
  0x5d   :  { %4443 = vmatpush.bf16.msra.mxu2 %v7293_v24  ;;  %v7351_v24 = vld [vmem:[#allocation5 + $0x470] sm:$0xff] }
  0x5e   :  { %4456 = vmatpush.bf16.msra.mxu3 %v7301_v25  ;;  %v7359_v25 = vld [vmem:[#allocation5 + $0x4b0] sm:$0xff] }
  0x5f   :  { %4418 = vmatpush.bf16.msra.mxu0 %v7276_v26  ;;  %v7367_v26 = vld [vmem:[#allocation5 + $0x4f0] sm:$0xff] }
  0x60   :  { %4431 = vmatpush.bf16.msra.mxu1 %v7284_v27  ;;  %v7342_v27 = vld [vmem:[#allocation5 + $0x428] sm:$0xff] }
  0x61   :  { %4444 = vmatpush.bf16.msra.mxu2 %v7292_v28  ;;  %v7350_v28 = vld [vmem:[#allocation5 + $0x468] sm:$0xff] }
  0x62   :  { %4457 = vmatpush.bf16.msra.mxu3 %v7300_v29  ;;  %v7358_v29 = vld [vmem:[#allocation5 + $0x4a8] sm:$0xff] }
  0x63   :  { %4419 = vmatpush.bf16.msra.mxu0 %v7275_v30  ;;  %v7366_v30 = vld [vmem:[#allocation5 + $0x4e8] sm:$0xff] }
  0x64   :  { %4432 = vmatpush.bf16.msra.mxu1 %v7283_v31  ;;  %v7341_v31 = vld [vmem:[#allocation5 + $0x420] sm:$0xff] }
  0x65   :  { %4445 = vmatpush.bf16.msra.mxu2 %v7291_v32  ;;  %v7349_v32 = vld [vmem:[#allocation5 + $0x460] sm:$0xff] }
  0x66   :  { %4458 = vmatpush.bf16.msra.mxu3 %v7299_v33  ;;  %v7357_v33 = vld [vmem:[#allocation5 + $0x4a0] sm:$0xff] }
  0x67   :  { %4420 = vmatpush.bf16.msra.mxu0 %v7274_v34  ;;  %v7365_v34 = vld [vmem:[#allocation5 + $0x4e0] sm:$0xff] }
  0x68   :  { %4433 = vmatpush.bf16.msra.mxu1 %v7282_v35  ;;  %v7340_v35 = vld [vmem:[#allocation5 + $0x418] sm:$0xff] }
  0x69   :  { %4446 = vmatpush.bf16.msra.mxu2 %v7290_v36  ;;  %v7348_v36 = vld [vmem:[#allocation5 + $0x458] sm:$0xff] }
  0x6a   :  { %4459 = vmatpush.bf16.msra.mxu3 %v7298_v37  ;;  %v7356_v37 = vld [vmem:[#allocation5 + $0x498] sm:$0xff] }
  0x6b   :  { %4421 = vmatpush.bf16.msra.mxu0 %v7273_v38  ;;  %v7364_v38 = vld [vmem:[#allocation5 + $0x4d8] sm:$0xff] }
  0x6c   :  { %4434 = vmatpush.bf16.msra.mxu1 %v7281_v39  ;;  %v7339_v39 = vld [vmem:[#allocation5 + $0x410] sm:$0xff] }
  0x6d   :  { %4447 = vmatpush.bf16.msra.mxu2 %v7289_v40  ;;  %v7347_v40 = vld [vmem:[#allocation5 + $0x450] sm:$0xff] }
  0x6e   :  { %4460 = vmatpush.bf16.msra.mxu3 %v7297_v41  ;;  %4422 = vmatmul.bf16.vlgmr.msra.gmra.mxu0 %v1106_v46  ;;  %v7355_v41 = vld [vmem:[#allocation5 + $0x490] sm:$0xff]  ;;  %v7362_v46 = vld [vmem:[#allocation5 + $0x4c8] sm:$0xff] }
  0x6f   :  { %4466 = vmatpush.bf16.msrb.mxu0 %v7312_v42  ;;  %4435 = vmatmul.bf16.vlgmr.msra.gmra.mxu1 %v1107_v48  ;;  %v7363_v42 = vld [vmem:[#allocation5 + $0x4d0] sm:$0xff]  ;;  %v7345_v48 = vld [vmem:[#allocation5 + $0x440] sm:$0xff] }
  0x70   :  { %4479 = vmatpush.bf16.msrb.mxu1 %v7320_v43  ;;  %4448 = vmatmul.bf16.vlgmr.msra.gmra.mxu2 %v1108_v47  ;;  %v7338_v43 = vld [vmem:[#allocation5 + $0x408] sm:$0xff]  ;;  %v7337_v47 = vld [vmem:[#allocation5 + $0x400] sm:$0xff] }
  0x71   :  { %4492 = vmatpush.bf16.msrb.mxu2 %v7328_v44  ;;  %4461 = vmatmul.bf16.vlgmr.msra.gmra.mxu3 %v1109_v49  ;;  %v7346_v44 = vld [vmem:[#allocation5 + $0x448] sm:$0xff]  ;;  %v7353_v49 = vld [vmem:[#allocation5 + $0x480] sm:$0xff] }
  0x72   :  { %4505 = vmatpush.bf16.msrb.mxu3 %v7336_v45  ;;  %v7354_v45 = vld [vmem:[#allocation5 + $0x488] sm:$0xff] }
  0x73   :  { %4467 = vmatpush.bf16.msrb.mxu0 %v7311_v50  ;;  %v7361_v50 = vld [vmem:[#allocation5 + $0x4c0] sm:$0xff] }
  0x74   :  { %4480 = vmatpush.bf16.msrb.mxu1 %v7319_v51  ;;  %v7376_v51 = vld [vmem:[#allocation5 + $0x538] sm:$0xff] }
  0x75   :  { %4493 = vmatpush.bf16.msrb.mxu2 %v7327_v52  ;;  %v7384_v52 = vld [vmem:[#allocation5 + $0x578] sm:$0xff] }
  0x76   :  { %4506 = vmatpush.bf16.msrb.mxu3 %v7335_v53  ;;  %v7392_v53 = vld [vmem:[#allocation5 + $0x5b8] sm:$0xff] }
  0x77   :  { %4468 = vmatpush.bf16.msrb.mxu0 %v7310_v54  ;;  %v7400_v54 = vld [vmem:[#allocation5 + $0x5f8] sm:$0xff] }
  0x78   :  { %4481 = vmatpush.bf16.msrb.mxu1 %v7318_v55  ;;  %v1116_v55 = vld [vmem:[#allocation1] sm:$0xff] }
  0x79   :  { %4494 = vmatpush.bf16.msrb.mxu2 %v7326_v56  ;;  %v1118_v56 = vld [vmem:[#allocation1 + $0x12] sm:$0xff] }
  0x7a   :  { %4507 = vmatpush.bf16.msrb.mxu3 %v7334_v57  ;;  %v1117_v57 = vld [vmem:[#allocation1 + $0x9] sm:$0xff] }
  0x7b   :  { %4469 = vmatpush.bf16.msrb.mxu0 %v7309_v58  ;;  %v1119_v58 = vld [vmem:[#allocation1 + $0x1b] sm:$0xff] }
  0x7c   :  { %4482 = vmatpush.bf16.msrb.mxu1 %v7317_v59  ;;  %v7375_v59 = vld [vmem:[#allocation5 + $0x530] sm:$0xff] }
  0x7d   :  { %4495 = vmatpush.bf16.msrb.mxu2 %v7325_v60  ;;  %v7383_v60 = vld [vmem:[#allocation5 + $0x570] sm:$0xff] }
  0x7e   :  { %4508 = vmatpush.bf16.msrb.mxu3 %v7333_v61  ;;  %v7391_v61 = vld [vmem:[#allocation5 + $0x5b0] sm:$0xff] }
  0x7f   :  { %4470 = vmatpush.bf16.msrb.mxu0 %v7308_v62  ;;  %v7399_v62 = vld [vmem:[#allocation5 + $0x5f0] sm:$0xff] }
  0x80   :  { %4483 = vmatpush.bf16.msrb.mxu1 %v7316_v63  ;;  %v7374_v63 = vld [vmem:[#allocation5 + $0x528] sm:$0xff] }
  0x81   :  { %4496 = vmatpush.bf16.msrb.mxu2 %v7324_v0  ;;  %v7382_v0 = vld [vmem:[#allocation5 + $0x568] sm:$0xff] }
  0x82   :  { %4509 = vmatpush.bf16.msrb.mxu3 %v7332_v1  ;;  %v7727_v1 = vld [vmem:[#allocation7] ss:$0 sm:$0xff] }
  0x83   :  { %4471 = vmatpush.bf16.msrb.mxu0 %v7307_v2  ;;  %v7390_v2 = vld [vmem:[#allocation5 + $0x5a8] sm:$0xff] }
  0x84   :  { %4484 = vmatpush.bf16.msrb.mxu1 %v7315_v3  ;;  %v7398_v3 = vld [vmem:[#allocation5 + $0x5e8] sm:$0xff] }
  0x85   :  { %4497 = vmatpush.bf16.msrb.mxu2 %v7323_v4 }
  0x86   :  { %4510 = vmatpush.bf16.msrb.mxu3 %v7331_v5  ;;  %v7373_v5 = vld [vmem:[#allocation5 + $0x520] sm:$0xff] }
  0x87   :  { %4472 = vmatpush.bf16.msrb.mxu0 %v7306_v6  ;;  %v7381_v6 = vld [vmem:[#allocation5 + $0x560] sm:$0xff] }
  0x88   :  { %4485 = vmatpush.bf16.msrb.mxu1 %v7314_v7 }
  0x89   :  { %4498 = vmatpush.bf16.msrb.mxu2 %v7322_v8 }
  0x8a   :  { %4511 = vmatpush.bf16.msrb.mxu3 %v7330_v9  ;;  %v7389_v9 = vld [vmem:[#allocation5 + $0x5a0] sm:$0xff] }
  0x8b   :  { %4473 = vmatpush.bf16.msrb.mxu0 %v7305_v15  ;;  %v7396_v15 = vld [vmem:[#allocation5 + $0x5d8] sm:$0xff] }
  0x8c   :  { %4486 = vmatpush.bf16.msrb.mxu1 %v7313_v16 }
  0x8d   :  { %4499 = vmatpush.bf16.msrb.mxu2 %v7321_v17 }
  0x8e   :  { %4512 = vmatpush.bf16.msrb.mxu3 %v7329_v18  ;;  %4474 = vmatmul.bf16.vlgmr.msrb.gmra.mxu0 %v1110_v10  ;;  %v7397_v10 = vld [vmem:[#allocation5 + $0x5e0] sm:$0xff] }
  0x8f   :  { %4518 = vmatpush.bf16.msra.mxu0 %v7344_v19  ;;  %4487 = vmatmul.bf16.vlgmr.msrb.gmra.mxu1 %v1111_v12  ;;  %v7372_v12 = vld [vmem:[#allocation5 + $0x518] sm:$0xff] }
  0x90   :  { %4531 = vmatpush.bf16.msra.mxu1 %v7352_v20  ;;  %4500 = vmatmul.bf16.vlgmr.msrb.gmra.mxu2 %v1112_v11  ;;  %v7371_v20 = vld [vmem:[#allocation5 + $0x510] sm:$0xff] }
  0x91   :  { %4544 = vmatpush.bf16.msra.mxu2 %v7360_v21  ;;  %4513 = vmatmul.bf16.vlgmr.msrb.gmra.mxu3 %v1113_v13  ;;  %v7380_v13 = vld [vmem:[#allocation5 + $0x558] sm:$0xff]  ;;  %v7379_v21 = vld [vmem:[#allocation5 + $0x550] sm:$0xff] }
  0x92   :  { %4557 = vmatpush.bf16.msra.mxu3 %v7368_v22 }
  0x93   :  { %4519 = vmatpush.bf16.msra.mxu0 %v7343_v23 }
  0x94   :  { %4532 = vmatpush.bf16.msra.mxu1 %v7351_v24  ;;  %v7387_v24 = vld [vmem:[#allocation5 + $0x590] sm:$0xff] }
  0x95   :  { %4545 = vmatpush.bf16.msra.mxu2 %v7359_v25  ;;  %v7395_v25 = vld [vmem:[#allocation5 + $0x5d0] sm:$0xff] }
  0x96   :  { %4558 = vmatpush.bf16.msra.mxu3 %v7367_v26  ;;  %v7370_v26 = vld [vmem:[#allocation5 + $0x508] sm:$0xff] }
  0x97   :  { %4520 = vmatpush.bf16.msra.mxu0 %v7342_v27  ;;  %v7378_v27 = vld [vmem:[#allocation5 + $0x548] sm:$0xff] }
  0x98   :  { %4533 = vmatpush.bf16.msra.mxu1 %v7350_v28  ;;  %v7386_v28 = vld [vmem:[#allocation5 + $0x588] sm:$0xff] }
  0x99   :  { %4546 = vmatpush.bf16.msra.mxu2 %v7358_v29  ;;  %v7394_v29 = vld [vmem:[#allocation5 + $0x5c8] sm:$0xff] }
  0x9a   :  { %4559 = vmatpush.bf16.msra.mxu3 %v7366_v30  ;;  %v1120_v30 = vld [vmem:[#allocation1 + $0x24] sm:$0xff] }
  0x9b   :  { %4521 = vmatpush.bf16.msra.mxu0 %v7341_v31  ;;  %v1122_v31 = vld [vmem:[#allocation1 + $0x36] sm:$0xff] }
  0x9c   :  { %4534 = vmatpush.bf16.msra.mxu1 %v7349_v32 }
  0x9d   :  { %4547 = vmatpush.bf16.msra.mxu2 %v7357_v33  ;;  %v1121_v33 = vld [vmem:[#allocation1 + $0x2d] sm:$0xff] }
  0x9e   :  { %4560 = vmatpush.bf16.msra.mxu3 %v7365_v34  ;;  %v1123_v34 = vld [vmem:[#allocation1 + $0x3f] sm:$0xff] }
  0x9f   :  { %4522 = vmatpush.bf16.msra.mxu0 %v7340_v35 }
  0xa0   :  { %4535 = vmatpush.bf16.msra.mxu1 %v7348_v36  ;;  %v61_v36 = vld [vmem:[#allocation2 + $0x18] sm:$0xff] }
  0xa1   :  { %4548 = vmatpush.bf16.msra.mxu2 %v7356_v37  ;;  %1125 = vst [vmem:[#allocation1] ss:$9 sm:$0xff] %v61_v36  ;;  %v7369_v37 = vld [vmem:[#allocation5 + $0x500] sm:$0xff]  ;;  %v7462_v36 = vld [vmem:[#allocation5 + $0x7e8] sm:$0xff] }
  0xa2   :  { %4561 = vmatpush.bf16.msra.mxu3 %v7364_v38  ;;  %v7377_v38 = vld [vmem:[#allocation5 + $0x540] sm:$0xff] }
  0xa3   :  { %4523 = vmatpush.bf16.msra.mxu0 %v7339_v39  ;;  %v7385_v39 = vld [vmem:[#allocation5 + $0x580] sm:$0xff] }
  0xa4   :  { %4536 = vmatpush.bf16.msra.mxu1 %v7347_v40  ;;  %v7393_v40 = vld [vmem:[#allocation5 + $0x5c0] sm:$0xff] }
  0xa5   :  { %4549 = vmatpush.bf16.msra.mxu2 %v7355_v41  ;;  %v7408_v41 = vld [vmem:[#allocation5 + $0x638] sm:$0xff] }
  0xa6   :  { %4562 = vmatpush.bf16.msra.mxu3 %v7363_v42  ;;  %v7416_v42 = vld [vmem:[#allocation5 + $0x678] sm:$0xff] }
  0xa7   :  { %4524 = vmatpush.bf16.msra.mxu0 %v7338_v43  ;;  %v7424_v43 = vld [vmem:[#allocation5 + $0x6b8] sm:$0xff] }
  0xa8   :  { %4537 = vmatpush.bf16.msra.mxu1 %v7346_v44  ;;  %v7432_v44 = vld [vmem:[#allocation5 + $0x6f8] sm:$0xff] }
  0xa9   :  { %4550 = vmatpush.bf16.msra.mxu2 %v7354_v45  ;;  %v7407_v45 = vld [vmem:[#allocation5 + $0x630] sm:$0xff] }
  0xaa   :  { %4563 = vmatpush.bf16.msra.mxu3 %v7362_v46  ;;  %v7415_v46 = vld [vmem:[#allocation5 + $0x670] sm:$0xff] }
  0xab   :  { %4525 = vmatpush.bf16.msra.mxu0 %v7337_v47  ;;  %v4319_v4 = vpop.f32.mrf.mxu0  ;;  %v7423_v47 = vld [vmem:[#allocation5 + $0x6b0] sm:$0xff] }
  0xac   :  { %4538 = vmatpush.bf16.msra.mxu1 %v7345_v48  ;;  %v4320_v7 = vadd.f32 %v7727_v1, %v4319_v4  ;;  %v4332_v8 = vpop.f32.mrf.mxu1  ;;  %v7431_v48 = vld [vmem:[#allocation5 + $0x6f0] sm:$0xff] }
  0xad   :  { %4551 = vmatpush.bf16.msra.mxu2 %v7353_v49  ;;  %v7406_v49 = vld [vmem:[#allocation5 + $0x628] sm:$0xff] }
  0xae   :  { %4564 = vmatpush.bf16.msra.mxu3 %v7361_v50  ;;  %4526 = vmatmul.bf16.vlgmr.msra.gmra.mxu0 %v1116_v55  ;;  %v4333_v11 = vadd.f32 %v4332_v8, %v4320_v7  ;;  %v7414_v50 = vld [vmem:[#allocation5 + $0x668] sm:$0xff]  ;;  %v7413_v55 = vld [vmem:[#allocation5 + $0x660] sm:$0xff] }
  0xaf   :  { %4570 = vmatpush.bf16.msrb.mxu0 %v7376_v51  ;;  %4539 = vmatmul.bf16.vlgmr.msra.gmra.mxu1 %v1117_v57  ;;  %v7422_v51 = vld [vmem:[#allocation5 + $0x6a8] sm:$0xff] }
  0xb0   :  { %4583 = vmatpush.bf16.msrb.mxu1 %v7384_v52  ;;  %4552 = vmatmul.bf16.vlgmr.msra.gmra.mxu2 %v1118_v56  ;;  %v7430_v52 = vld [vmem:[#allocation5 + $0x6e8] sm:$0xff] }
  0xb1   :  { %4596 = vmatpush.bf16.msrb.mxu2 %v7392_v53  ;;  %4565 = vmatmul.bf16.vlgmr.msra.gmra.mxu3 %v1119_v58  ;;  %v7421_v58 = vld [vmem:[#allocation5 + $0x6a0] sm:$0xff] }
  0xb2   :  { %4609 = vmatpush.bf16.msrb.mxu3 %v7400_v54  ;;  %v7405_v54 = vld [vmem:[#allocation5 + $0x620] sm:$0xff] }
  0xb3   :  { %4571 = vmatpush.bf16.msrb.mxu0 %v7375_v59  ;;  %v4345_v16 = vpop.f32.mrf.mxu2  ;;  %v4321_v19 = vpop.f32.mrf.mxu0  ;;  %v7429_v59 = vld [vmem:[#allocation5 + $0x6e0] sm:$0xff] }
  0xb4   :  { %4584 = vmatpush.bf16.msrb.mxu1 %v7383_v60  ;;  %v4346_v17 = vadd.f32 %v4345_v16, %v4333_v11  ;;  %v4358_v18 = vpop.f32.mrf.mxu3  ;;  %v4334_v23 = vpop.f32.mrf.mxu1  ;;  %v7402_v11 = vld [vmem:[#allocation5 + $0x608] sm:$0xff]  ;;  %v7417_v19 = vld [vmem:[#allocation5 + $0x680] sm:$0xff] }
  0xb5   :  { %4597 = vmatpush.bf16.msrb.mxu2 %v7391_v61  ;;  %v7404_v61 = vld [vmem:[#allocation5 + $0x618] sm:$0xff] }
  0xb6   :  { %4610 = vmatpush.bf16.msrb.mxu3 %v7399_v62  ;;  %v7865_v22 = vadd.f32 %v4358_v18, %v4346_v17  ;;  %v7412_v62 = vld [vmem:[#allocation5 + $0x658] sm:$0xff]  ;;  %v7401_v17 = vld [vmem:[#allocation5 + $0x600] sm:$0xff] }
  0xb7   :  { %4572 = vmatpush.bf16.msrb.mxu0 %v7374_v63  ;;  %v7420_v63 = vld [vmem:[#allocation5 + $0x698] sm:$0xff]  ;;  %v7409_v18 = vld [vmem:[#allocation5 + $0x640] sm:$0xff] }
  0xb8   :  { %4585 = vmatpush.bf16.msrb.mxu1 %v7382_v0  ;;  %v7428_v0 = vld [vmem:[#allocation5 + $0x6d8] sm:$0xff] }
  0xb9   :  { %4598 = vmatpush.bf16.msrb.mxu2 %v7390_v2  ;;  %v7456_v23 = vld [vmem:[#allocation5 + $0x7b8] sm:$0xff] }
  0xba   :  { %4611 = vmatpush.bf16.msrb.mxu3 %v7398_v3 }
  0xbb   :  { %4573 = vmatpush.bf16.msrb.mxu0 %v7373_v5  ;;  %v4347_v32 = vpop.f32.mrf.mxu2  ;;  %v7403_v5 = vld [vmem:[#allocation5 + $0x610] sm:$0xff] }
  0xbc   :  { %4586 = vmatpush.bf16.msrb.mxu1 %v7381_v6  ;;  %v4360_v35 = vpop.f32.mrf.mxu3  ;;  %v7411_v6 = vld [vmem:[#allocation5 + $0x650] sm:$0xff] }
  0xbd   :  { %4599 = vmatpush.bf16.msrb.mxu2 %v7389_v9  ;;  %v7419_v9 = vld [vmem:[#allocation5 + $0x690] sm:$0xff]  ;;  %v7454_v35 = vld [vmem:[#allocation5 + $0x7a8] sm:$0xff] }
  0xbe   :  { %4612 = vmatpush.bf16.msrb.mxu3 %v7397_v10  ;;  %v7427_v10 = vld [vmem:[#allocation5 + $0x6d0] sm:$0xff] }
  0xbf   :  { %4574 = vmatpush.bf16.msrb.mxu0 %v7372_v12  ;;  %v7410_v12 = vld [vmem:[#allocation5 + $0x648] sm:$0xff]  ;;  %v7463_v32 = vld [vmem:[#allocation5 + $0x7f0] sm:$0xff] }
  0xc0   :  { %4587 = vmatpush.bf16.msrb.mxu1 %v7380_v13  ;;  %v7418_v13 = vld [vmem:[#allocation5 + $0x688] sm:$0xff] }
  0xc1   :  { %4600 = vmatpush.bf16.msrb.mxu2 %v7388_v14  ;;  %v7426_v14 = vld [vmem:[#allocation5 + $0x6c8] sm:$0xff] }
  0xc2   :  { %4613 = vmatpush.bf16.msrb.mxu3 %v7396_v15 }
  0xc3   :  { %4575 = vmatpush.bf16.msrb.mxu0 %v7371_v20  ;;  %v7425_v20 = vld [vmem:[#allocation5 + $0x6c0] sm:$0xff] }
  0xc4   :  { %4588 = vmatpush.bf16.msrb.mxu1 %v7379_v21  ;;  %v7440_v21 = vld [vmem:[#allocation5 + $0x738] sm:$0xff] }
  0xc5   :  { %4601 = vmatpush.bf16.msrb.mxu2 %v7387_v24  ;;  %v7464_v24 = vld [vmem:[#allocation5 + $0x7f8] sm:$0xff] }
  0xc6   :  { %4614 = vmatpush.bf16.msrb.mxu3 %v7395_v25  ;;  %v1126_v25 = vld [vmem:[#allocation1] sm:$0xff] }
  0xc7   :  { %4576 = vmatpush.bf16.msrb.mxu0 %v7370_v26  ;;  %v1128_v26 = vld [vmem:[#allocation1 + $0x12] sm:$0xff] }
  0xc8   :  { %4589 = vmatpush.bf16.msrb.mxu1 %v7378_v27  ;;  %v1127_v27 = vld [vmem:[#allocation1 + $0x9] sm:$0xff] }
  0xc9   :  { %4602 = vmatpush.bf16.msrb.mxu2 %v7386_v28  ;;  %v1129_v28 = vld [vmem:[#allocation1 + $0x1b] sm:$0xff] }
  0xca   :  { %4615 = vmatpush.bf16.msrb.mxu3 %v7394_v29  ;;  %v7439_v29 = vld [vmem:[#allocation5 + $0x730] sm:$0xff] }
  0xcb   :  { %4577 = vmatpush.bf16.msrb.mxu0 %v7369_v37  ;;  %v4371_v53 = vpop.f32.mrf.mxu0 }
  0xcc   :  { %4590 = vmatpush.bf16.msrb.mxu1 %v7377_v38  ;;  %v4372_v56 = vadd.f32 %v4371_v53, %v7865_v22  ;;  %v4384_v57 = vpop.f32.mrf.mxu1  ;;  %v7448_v22 = vld [vmem:[#allocation5 + $0x778] sm:$0xff] }
  0xcd   :  { %4603 = vmatpush.bf16.msrb.mxu2 %v7385_v39  ;;  %v7437_v39 = vld [vmem:[#allocation5 + $0x720] sm:$0xff] }
  0xce   :  { %4616 = vmatpush.bf16.msrb.mxu3 %v7393_v40  ;;  %4578 = vmatmul.bf16.vlgmr.msrb.gmra.mxu0 %v1120_v30  ;;  %v4385_v60 = vadd.f32 %v4384_v57, %v4372_v56  ;;  %v7447_v30 = vld [vmem:[#allocation5 + $0x770] sm:$0xff]  ;;  %v7445_v40 = vld [vmem:[#allocation5 + $0x760] sm:$0xff] }
  0xcf   :  { %4622 = vmatpush.bf16.msra.mxu0 %v7408_v41  ;;  %4591 = vmatmul.bf16.vlgmr.msrb.gmra.mxu1 %v1121_v33  ;;  %v7438_v33 = vld [vmem:[#allocation5 + $0x728] sm:$0xff]  ;;  %v7451_v57 = vld [vmem:[#allocation5 + $0x790] sm:$0xff] }
  0xd0   :  { %4635 = vmatpush.bf16.msra.mxu1 %v7416_v42  ;;  %4604 = vmatmul.bf16.vlgmr.msrb.gmra.mxu2 %v1122_v31  ;;  %v7455_v31 = vld [vmem:[#allocation5 + $0x7b0] sm:$0xff]  ;;  %v7453_v42 = vld [vmem:[#allocation5 + $0x7a0] sm:$0xff] }
  0xd1   :  { %4648 = vmatpush.bf16.msra.mxu2 %v7424_v43  ;;  %4617 = vmatmul.bf16.vlgmr.msrb.gmra.mxu3 %v1123_v34  ;;  %v7446_v34 = vld [vmem:[#allocation5 + $0x768] sm:$0xff]  ;;  %v7461_v43 = vld [vmem:[#allocation5 + $0x7e0] sm:$0xff] }
  0xd2   :  { %4661 = vmatpush.bf16.msra.mxu3 %v7432_v44 }
  0xd3   :  { %4623 = vmatpush.bf16.msra.mxu0 %v7407_v45  ;;  %v4397_v1 = vpop.f32.mrf.mxu2  ;;  %v4373_v4 = vpop.f32.mrf.mxu0  ;;  %v7436_v45 = vld [vmem:[#allocation5 + $0x718] sm:$0xff] }
  0xd4   :  { %4636 = vmatpush.bf16.msra.mxu1 %v7415_v46  ;;  %v4398_v2 = vadd.f32 %v4397_v1, %v4385_v60  ;;  %v4410_v3 = vpop.f32.mrf.mxu3  ;;  %v4386_v8 = vpop.f32.mrf.mxu1  ;;  %v7444_v46 = vld [vmem:[#allocation5 + $0x758] sm:$0xff]  ;;  %v7442_v60 = vld [vmem:[#allocation5 + $0x748] sm:$0xff] }
  0xd5   :  { %4649 = vmatpush.bf16.msra.mxu2 %v7423_v47  ;;  %v7452_v47 = vld [vmem:[#allocation5 + $0x798] sm:$0xff]  ;;  %v7449_v8 = vld [vmem:[#allocation5 + $0x780] sm:$0xff] }
  0xd6   :  { %4662 = vmatpush.bf16.msra.mxu3 %v7431_v48  ;;  %v4411_v7 = vadd.f32 %v4410_v3, %v4398_v2  ;;  %v7460_v48 = vld [vmem:[#allocation5 + $0x7d8] sm:$0xff]  ;;  %v1131_v2 = vld [vmem:[#allocation1 + $0x2d] sm:$0xff] }
  0xd7   :  { %4624 = vmatpush.bf16.msra.mxu0 %v7406_v49  ;;  %v1133_v3 = vld [vmem:[#allocation1 + $0x3f] sm:$0xff] }
  0xd8   :  { %4637 = vmatpush.bf16.msra.mxu1 %v7414_v50 }
  0xd9   :  { %4650 = vmatpush.bf16.msra.mxu2 %v7422_v51 }
  0xda   :  { %4663 = vmatpush.bf16.msra.mxu3 %v7430_v52 }
  0xdb   :  { %4625 = vmatpush.bf16.msra.mxu0 %v7405_v54  ;;  %v4399_v15 = vpop.f32.mrf.mxu2  ;;  %v7435_v54 = vld [vmem:[#allocation5 + $0x710] sm:$0xff] }
  0xdc   :  { %4638 = vmatpush.bf16.msra.mxu1 %v7413_v55  ;;  %v4412_v16 = vpop.f32.mrf.mxu3  ;;  %v7443_v55 = vld [vmem:[#allocation5 + $0x750] sm:$0xff] }
  0xdd   :  { %4651 = vmatpush.bf16.msra.mxu2 %v7421_v58  ;;  %v7459_v58 = vld [vmem:[#allocation5 + $0x7d0] sm:$0xff] }
  0xde   :  { %4664 = vmatpush.bf16.msra.mxu3 %v7429_v59  ;;  %v7434_v59 = vld [vmem:[#allocation5 + $0x708] sm:$0xff]  ;;  %v7479_v15 = vld [vmem:[#allocation5 + $0x870] sm:$0xff] }
  0xdf   :  { %4626 = vmatpush.bf16.msra.mxu0 %v7404_v61  ;;  %v7450_v61 = vld [vmem:[#allocation5 + $0x788] sm:$0xff]  ;;  %v7487_v16 = vld [vmem:[#allocation5 + $0x8b0] sm:$0xff] }
  0xe0   :  { %4639 = vmatpush.bf16.msra.mxu1 %v7412_v62  ;;  %v7458_v62 = vld [vmem:[#allocation5 + $0x7c8] sm:$0xff] }
  0xe1   :  { %4652 = vmatpush.bf16.msra.mxu2 %v7420_v63  ;;  %v1130_v63 = vld [vmem:[#allocation1 + $0x24] sm:$0xff] }
  0xe2   :  { %4665 = vmatpush.bf16.msra.mxu3 %v7428_v0  ;;  %v1132_v0 = vld [vmem:[#allocation1 + $0x36] sm:$0xff] }
  0xe3   :  { %4627 = vmatpush.bf16.msra.mxu0 %v7403_v5  ;;  %v62_v5 = vld [vmem:[#allocation2 + $0x20] sm:$0xff] }
  0xe4   :  { %4640 = vmatpush.bf16.msra.mxu1 %v7411_v6  ;;  %1135 = vst [vmem:[#allocation1] ss:$9 sm:$0xff] %v62_v5  ;;  %v7433_v6 = vld [vmem:[#allocation5 + $0x700] sm:$0xff]  ;;  %v7526_v5 = vld [vmem:[#allocation5 + $0x9e8] sm:$0xff] }
  0xe5   :  { %4653 = vmatpush.bf16.msra.mxu2 %v7419_v9  ;;  %v7457_v9 = vld [vmem:[#allocation5 + $0x7c0] sm:$0xff] }
  0xe6   :  { %4666 = vmatpush.bf16.msra.mxu3 %v7427_v10  ;;  %v7472_v10 = vld [vmem:[#allocation5 + $0x838] sm:$0xff] }
  0xe7   :  { %4628 = vmatpush.bf16.msra.mxu0 %v7402_v11  ;;  %v7480_v11 = vld [vmem:[#allocation5 + $0x878] sm:$0xff] }
  0xe8   :  { %4641 = vmatpush.bf16.msra.mxu1 %v7410_v12  ;;  %v7488_v12 = vld [vmem:[#allocation5 + $0x8b8] sm:$0xff] }
  0xe9   :  { %4654 = vmatpush.bf16.msra.mxu2 %v7418_v13  ;;  %v7496_v13 = vld [vmem:[#allocation5 + $0x8f8] sm:$0xff] }
  0xea   :  { %4667 = vmatpush.bf16.msra.mxu3 %v7426_v14  ;;  %v7471_v14 = vld [vmem:[#allocation5 + $0x830] sm:$0xff] }
  0xeb   :  { %4629 = vmatpush.bf16.msra.mxu0 %v7401_v17  ;;  %v4423_v37 = vpop.f32.mrf.mxu0  ;;  %v7495_v17 = vld [vmem:[#allocation5 + $0x8f0] sm:$0xff] }
  0xec   :  { %4642 = vmatpush.bf16.msra.mxu1 %v7409_v18  ;;  %v4424_v38 = vadd.f32 %v4423_v37, %v4411_v7  ;;  %v4436_v41 = vpop.f32.mrf.mxu1  ;;  %v7441_v7 = vld [vmem:[#allocation5 + $0x740] sm:$0xff]  ;;  %v7470_v18 = vld [vmem:[#allocation5 + $0x828] sm:$0xff] }
  0xed   :  { %4655 = vmatpush.bf16.msra.mxu2 %v7417_v19  ;;  %v7478_v19 = vld [vmem:[#allocation5 + $0x868] sm:$0xff] }
  0xee   :  { %4668 = vmatpush.bf16.msra.mxu3 %v7425_v20  ;;  %4630 = vmatmul.bf16.vlgmr.msra.gmra.mxu0 %v1126_v25  ;;  %v4437_v44 = vadd.f32 %v4436_v41, %v4424_v38  ;;  %v7486_v20 = vld [vmem:[#allocation5 + $0x8a8] sm:$0xff]  ;;  %v7477_v25 = vld [vmem:[#allocation5 + $0x860] sm:$0xff] }
  0xef   :  { %4674 = vmatpush.bf16.msrb.mxu0 %v7440_v21  ;;  %4643 = vmatmul.bf16.vlgmr.msra.gmra.mxu1 %v1127_v27  ;;  %v7494_v21 = vld [vmem:[#allocation5 + $0x8e8] sm:$0xff]  ;;  %v7485_v27 = vld [vmem:[#allocation5 + $0x8a0] sm:$0xff] }
  0xf0   :  { %4687 = vmatpush.bf16.msrb.mxu1 %v7448_v22  ;;  %4656 = vmatmul.bf16.vlgmr.msra.gmra.mxu2 %v1128_v26 }
  0xf1   :  { %4700 = vmatpush.bf16.msrb.mxu2 %v7456_v23  ;;  %4669 = vmatmul.bf16.vlgmr.msra.gmra.mxu3 %v1129_v28  ;;  %v7493_v28 = vld [vmem:[#allocation5 + $0x8e0] sm:$0xff] }
  0xf2   :  { %4713 = vmatpush.bf16.msrb.mxu3 %v7464_v24  ;;  %v7469_v24 = vld [vmem:[#allocation5 + $0x820] sm:$0xff] }
  0xf3   :  { %4675 = vmatpush.bf16.msrb.mxu0 %v7439_v29  ;;  %v4449_v49 = vpop.f32.mrf.mxu2  ;;  %v4425_v52 = vpop.f32.mrf.mxu0 }
  0xf4   :  { %4688 = vmatpush.bf16.msrb.mxu1 %v7447_v30  ;;  %v4450_v50 = vadd.f32 %v4449_v49, %v4437_v44  ;;  %v4462_v51 = vpop.f32.mrf.mxu3  ;;  %v4438_v56 = vpop.f32.mrf.mxu1  ;;  %v7468_v30 = vld [vmem:[#allocation5 + $0x818] sm:$0xff]  ;;  %v7466_v44 = vld [vmem:[#allocation5 + $0x808] sm:$0xff]  ;;  %v7481_v52 = vld [vmem:[#allocation5 + $0x880] sm:$0xff] }
  0xf5   :  { %4701 = vmatpush.bf16.msrb.mxu2 %v7455_v31  ;;  %v7476_v31 = vld [vmem:[#allocation5 + $0x858] sm:$0xff] }
  0xf6   :  { %4714 = vmatpush.bf16.msrb.mxu3 %v7463_v32  ;;  %v7868_v53 = vadd.f32 %v4462_v51, %v4450_v50  ;;  %v7484_v32 = vld [vmem:[#allocation5 + $0x898] sm:$0xff]  ;;  %v7465_v50 = vld [vmem:[#allocation5 + $0x800] sm:$0xff] }
  0xf7   :  { %4676 = vmatpush.bf16.msrb.mxu0 %v7438_v33  ;;  %v7492_v33 = vld [vmem:[#allocation5 + $0x8d8] sm:$0xff]  ;;  %v7473_v51 = vld [vmem:[#allocation5 + $0x840] sm:$0xff] }
  0xf8   :  { %4689 = vmatpush.bf16.msrb.mxu1 %v7446_v34  ;;  %v7520_v56 = vld [vmem:[#allocation5 + $0x9b8] sm:$0xff] }
  0xf9   :  { %4702 = vmatpush.bf16.msrb.mxu2 %v7454_v35 }
  0xfa   :  { %4715 = vmatpush.bf16.msrb.mxu3 %v7462_v36 }
  0xfb   :  { %4677 = vmatpush.bf16.msrb.mxu0 %v7437_v39  ;;  %v4451_v1 = vpop.f32.mrf.mxu2  ;;  %v7467_v39 = vld [vmem:[#allocation5 + $0x810] sm:$0xff] }
  0xfc   :  { %4690 = vmatpush.bf16.msrb.mxu1 %v7445_v40  ;;  %v4464_v4 = vpop.f32.mrf.mxu3  ;;  %v7475_v40 = vld [vmem:[#allocation5 + $0x850] sm:$0xff] }
  0xfd   :  { %4703 = vmatpush.bf16.msrb.mxu2 %v7453_v42  ;;  %v7483_v42 = vld [vmem:[#allocation5 + $0x890] sm:$0xff]  ;;  %v7518_v4 = vld [vmem:[#allocation5 + $0x9a8] sm:$0xff] }
  0xfe   :  { %4716 = vmatpush.bf16.msrb.mxu3 %v7461_v43  ;;  %v7491_v43 = vld [vmem:[#allocation5 + $0x8d0] sm:$0xff] }
  0xff   :  { %4678 = vmatpush.bf16.msrb.mxu0 %v7436_v45  ;;  %v7474_v45 = vld [vmem:[#allocation5 + $0x848] sm:$0xff]  ;;  %v7527_v1 = vld [vmem:[#allocation5 + $0x9f0] sm:$0xff] }
 0x100   :  { %4691 = vmatpush.bf16.msrb.mxu1 %v7444_v46  ;;  %v7482_v46 = vld [vmem:[#allocation5 + $0x888] sm:$0xff] }
 0x101   :  { %4704 = vmatpush.bf16.msrb.mxu2 %v7452_v47  ;;  %v7490_v47 = vld [vmem:[#allocation5 + $0x8c8] sm:$0xff] }
 0x102   :  { %4717 = vmatpush.bf16.msrb.mxu3 %v7460_v48 }
 0x103   :  { %4679 = vmatpush.bf16.msrb.mxu0 %v7435_v54  ;;  %v7504_v54 = vld [vmem:[#allocation5 + $0x938] sm:$0xff] }
 0x104   :  { %4692 = vmatpush.bf16.msrb.mxu1 %v7443_v55  ;;  %v7512_v55 = vld [vmem:[#allocation5 + $0x978] sm:$0xff] }
 0x105   :  { %4705 = vmatpush.bf16.msrb.mxu2 %v7451_v57  ;;  %v7528_v57 = vld [vmem:[#allocation5 + $0x9f8] sm:$0xff] }
 0x106   :  { %4718 = vmatpush.bf16.msrb.mxu3 %v7459_v58  ;;  %v1136_v58 = vld [vmem:[#allocation1] sm:$0xff] }
 0x107   :  { %4680 = vmatpush.bf16.msrb.mxu0 %v7434_v59  ;;  %v1138_v59 = vld [vmem:[#allocation1 + $0x12] sm:$0xff] }
 0x108   :  { %4693 = vmatpush.bf16.msrb.mxu1 %v7442_v60  ;;  %v1137_v60 = vld [vmem:[#allocation1 + $0x9] sm:$0xff] }
 0x109   :  { %4706 = vmatpush.bf16.msrb.mxu2 %v7450_v61  ;;  %v1139_v61 = vld [vmem:[#allocation1 + $0x1b] sm:$0xff] }
 0x10a   :  { %4719 = vmatpush.bf16.msrb.mxu3 %v7458_v62  ;;  %v7503_v62 = vld [vmem:[#allocation5 + $0x930] sm:$0xff] }
 0x10b   :  { %4681 = vmatpush.bf16.msrb.mxu0 %v7433_v6  ;;  %v4475_v22 = vpop.f32.mrf.mxu0 }
 0x10c   :  { %4694 = vmatpush.bf16.msrb.mxu1 %v7441_v7  ;;  %v4476_v23 = vadd.f32 %v4475_v22, %v7868_v53  ;;  %v4488_v26 = vpop.f32.mrf.mxu1  ;;  %v7489_v53 = vld [vmem:[#allocation5 + $0x8c0] sm:$0xff] }
 0x10d   :  { %4707 = vmatpush.bf16.msrb.mxu2 %v7449_v8  ;;  %v7501_v8 = vld [vmem:[#allocation5 + $0x920] sm:$0xff] }
 0x10e   :  { %4720 = vmatpush.bf16.msrb.mxu3 %v7457_v9  ;;  %4682 = vmatmul.bf16.vlgmr.msrb.gmra.mxu0 %v1130_v63  ;;  %v4489_v29 = vadd.f32 %v4488_v26, %v4476_v23  ;;  %v7511_v63 = vld [vmem:[#allocation5 + $0x970] sm:$0xff]  ;;  %v7509_v9 = vld [vmem:[#allocation5 + $0x960] sm:$0xff] }
 0x10f   :  { %4726 = vmatpush.bf16.msra.mxu0 %v7472_v10  ;;  %4695 = vmatmul.bf16.vlgmr.msrb.gmra.mxu1 %v1131_v2  ;;  %v7502_v2 = vld [vmem:[#allocation5 + $0x928] sm:$0xff]  ;;  %v7499_v23 = vld [vmem:[#allocation5 + $0x910] sm:$0xff] }
 0x110   :  { %4739 = vmatpush.bf16.msra.mxu1 %v7480_v11  ;;  %4708 = vmatmul.bf16.vlgmr.msrb.gmra.mxu2 %v1132_v0  ;;  %v7519_v0 = vld [vmem:[#allocation5 + $0x9b0] sm:$0xff]  ;;  %v7517_v11 = vld [vmem:[#allocation5 + $0x9a0] sm:$0xff] }
 0x111   :  { %4752 = vmatpush.bf16.msra.mxu2 %v7488_v12  ;;  %4721 = vmatmul.bf16.vlgmr.msrb.gmra.mxu3 %v1133_v3  ;;  %v7510_v3 = vld [vmem:[#allocation5 + $0x968] sm:$0xff]  ;;  %v7525_v12 = vld [vmem:[#allocation5 + $0x9e0] sm:$0xff]  ;;  %v7515_v26 = vld [vmem:[#allocation5 + $0x990] sm:$0xff] }
 0x112   :  { %4765 = vmatpush.bf16.msra.mxu3 %v7496_v13 }
 0x113   :  { %4727 = vmatpush.bf16.msra.mxu0 %v7471_v14  ;;  %v4501_v34 = vpop.f32.mrf.mxu2  ;;  %v4477_v37 = vpop.f32.mrf.mxu0  ;;  %v7500_v14 = vld [vmem:[#allocation5 + $0x918] sm:$0xff] }
 0x114   :  { %4740 = vmatpush.bf16.msra.mxu1 %v7479_v15  ;;  %v4502_v35 = vadd.f32 %v4501_v34, %v4489_v29  ;;  %v4514_v36 = vpop.f32.mrf.mxu3  ;;  %v4490_v41 = vpop.f32.mrf.mxu1  ;;  %v7508_v15 = vld [vmem:[#allocation5 + $0x958] sm:$0xff]  ;;  %v7506_v29 = vld [vmem:[#allocation5 + $0x948] sm:$0xff] }
 0x115   :  { %4753 = vmatpush.bf16.msra.mxu2 %v7487_v16  ;;  %v7516_v16 = vld [vmem:[#allocation5 + $0x998] sm:$0xff]  ;;  %v7513_v41 = vld [vmem:[#allocation5 + $0x980] sm:$0xff] }
 0x116   :  { %4766 = vmatpush.bf16.msra.mxu3 %v7495_v17  ;;  %v4515_v38 = vadd.f32 %v4514_v36, %v4502_v35  ;;  %v7524_v17 = vld [vmem:[#allocation5 + $0x9d8] sm:$0xff]  ;;  %v1141_v35 = vld [vmem:[#allocation1 + $0x2d] sm:$0xff] }
 0x117   :  { %4728 = vmatpush.bf16.msra.mxu0 %v7470_v18  ;;  %v1143_v36 = vld [vmem:[#allocation1 + $0x3f] sm:$0xff] }
 0x118   :  { %4741 = vmatpush.bf16.msra.mxu1 %v7478_v19 }
 0x119   :  { %4754 = vmatpush.bf16.msra.mxu2 %v7486_v20 }
 0x11a   :  { %4767 = vmatpush.bf16.msra.mxu3 %v7494_v21 }
 0x11b   :  { %4729 = vmatpush.bf16.msra.mxu0 %v7469_v24  ;;  %v4503_v48 = vpop.f32.mrf.mxu2  ;;  %v7507_v24 = vld [vmem:[#allocation5 + $0x950] sm:$0xff] }
 0x11c   :  { %4742 = vmatpush.bf16.msra.mxu1 %v7477_v25  ;;  %v4516_v49 = vpop.f32.mrf.mxu3  ;;  %v7543_v48 = vld [vmem:[#allocation5 + $0xa70] sm:$0xff] }
 0x11d   :  { %4755 = vmatpush.bf16.msra.mxu2 %v7485_v27  ;;  %v7523_v27 = vld [vmem:[#allocation5 + $0x9d0] sm:$0xff] }
 0x11e   :  { %4768 = vmatpush.bf16.msra.mxu3 %v7493_v28  ;;  %v7498_v28 = vld [vmem:[#allocation5 + $0x908] sm:$0xff]  ;;  %v7551_v49 = vld [vmem:[#allocation5 + $0xab0] sm:$0xff] }
 0x11f   :  { %4730 = vmatpush.bf16.msra.mxu0 %v7468_v30  ;;  %v7514_v30 = vld [vmem:[#allocation5 + $0x988] sm:$0xff] }
 0x120   :  { %4743 = vmatpush.bf16.msra.mxu1 %v7476_v31  ;;  %v7522_v31 = vld [vmem:[#allocation5 + $0x9c8] sm:$0xff] }
 0x121   :  { %4756 = vmatpush.bf16.msra.mxu2 %v7484_v32  ;;  %v1140_v32 = vld [vmem:[#allocation1 + $0x24] sm:$0xff] }
 0x122   :  { %4769 = vmatpush.bf16.msra.mxu3 %v7492_v33  ;;  %v1142_v33 = vld [vmem:[#allocation1 + $0x36] sm:$0xff] }
 0x123   :  { %4731 = vmatpush.bf16.msra.mxu0 %v7467_v39  ;;  %v7497_v39 = vld [vmem:[#allocation5 + $0x900] sm:$0xff] }
 0x124   :  { %4744 = vmatpush.bf16.msra.mxu1 %v7475_v40  ;;  %v7505_v40 = vld [vmem:[#allocation5 + $0x940] sm:$0xff] }
 0x125   :  { %4757 = vmatpush.bf16.msra.mxu2 %v7483_v42  ;;  %v7521_v42 = vld [vmem:[#allocation5 + $0x9c0] sm:$0xff] }
 0x126   :  { %4770 = vmatpush.bf16.msra.mxu3 %v7491_v43  ;;  %v7536_v43 = vld [vmem:[#allocation5 + $0xa38] sm:$0xff] }
 0x127   :  { %4732 = vmatpush.bf16.msra.mxu0 %v7466_v44  ;;  %v7544_v44 = vld [vmem:[#allocation5 + $0xa78] sm:$0xff] }
 0x128   :  { %4745 = vmatpush.bf16.msra.mxu1 %v7474_v45  ;;  %v7552_v45 = vld [vmem:[#allocation5 + $0xab8] sm:$0xff] }
 0x129   :  { %4758 = vmatpush.bf16.msra.mxu2 %v7482_v46  ;;  %v7560_v46 = vld [vmem:[#allocation5 + $0xaf8] sm:$0xff] }
 0x12a   :  { %4771 = vmatpush.bf16.msra.mxu3 %v7490_v47  ;;  %v7535_v47 = vld [vmem:[#allocation5 + $0xa30] sm:$0xff] }
 0x12b   :  { %4733 = vmatpush.bf16.msra.mxu0 %v7465_v50  ;;  %v4527_v6 = vpop.f32.mrf.mxu0  ;;  %v7559_v50 = vld [vmem:[#allocation5 + $0xaf0] sm:$0xff] }
 0x12c   :  { %4746 = vmatpush.bf16.msra.mxu1 %v7473_v51  ;;  %v4528_v7 = vadd.f32 %v4527_v6, %v4515_v38  ;;  %v4540_v10 = vpop.f32.mrf.mxu1  ;;  %v63_v38 = vld [vmem:[#allocation2 + $0x28] sm:$0xff] }
 0x12d   :  { %4759 = vmatpush.bf16.msra.mxu2 %v7481_v52  ;;  %1145 = vst [vmem:[#allocation1] ss:$9 sm:$0xff] %v63_v38  ;;  %v7534_v51 = vld [vmem:[#allocation5 + $0xa28] sm:$0xff] }
 0x12e   :  { %4772 = vmatpush.bf16.msra.mxu3 %v7489_v53  ;;  %4734 = vmatmul.bf16.vlgmr.msra.gmra.mxu0 %v1136_v58  ;;  %v4541_v13 = vadd.f32 %v4540_v10, %v4528_v7  ;;  %v7542_v52 = vld [vmem:[#allocation5 + $0xa68] sm:$0xff]  ;;  %v7541_v58 = vld [vmem:[#allocation5 + $0xa60] sm:$0xff] }
 0x12f   :  { %4778 = vmatpush.bf16.msrb.mxu0 %v7504_v54  ;;  %4747 = vmatmul.bf16.vlgmr.msra.gmra.mxu1 %v1137_v60  ;;  %v7550_v53 = vld [vmem:[#allocation5 + $0xaa8] sm:$0xff]  ;;  %v7549_v60 = vld [vmem:[#allocation5 + $0xaa0] sm:$0xff] }
 0x130   :  { %4791 = vmatpush.bf16.msrb.mxu1 %v7512_v55  ;;  %4760 = vmatmul.bf16.vlgmr.msra.gmra.mxu2 %v1138_v59  ;;  %v7558_v54 = vld [vmem:[#allocation5 + $0xae8] sm:$0xff] }
 0x131   :  { %4804 = vmatpush.bf16.msrb.mxu2 %v7520_v56  ;;  %4773 = vmatmul.bf16.vlgmr.msra.gmra.mxu3 %v1139_v61  ;;  %v7557_v61 = vld [vmem:[#allocation5 + $0xae0] sm:$0xff]  ;;  %v7590_v38 = vld [vmem:[#allocation5 + $0xbe8] sm:$0xff] }
 0x132   :  { %4817 = vmatpush.bf16.msrb.mxu3 %v7528_v57  ;;  %v7533_v57 = vld [vmem:[#allocation5 + $0xa20] sm:$0xff] }
 0x133   :  { %4779 = vmatpush.bf16.msrb.mxu0 %v7503_v62  ;;  %v4553_v18 = vpop.f32.mrf.mxu2  ;;  %v4529_v21 = vpop.f32.mrf.mxu0 }
 0x134   :  { %4792 = vmatpush.bf16.msrb.mxu1 %v7511_v63  ;;  %v4554_v19 = vadd.f32 %v4553_v18, %v4541_v13  ;;  %v4566_v20 = vpop.f32.mrf.mxu3  ;;  %v4542_v25 = vpop.f32.mrf.mxu1  ;;  %v7532_v63 = vld [vmem:[#allocation5 + $0xa18] sm:$0xff]  ;;  %v7530_v13 = vld [vmem:[#allocation5 + $0xa08] sm:$0xff]  ;;  %v7545_v21 = vld [vmem:[#allocation5 + $0xa80] sm:$0xff] }
 0x135   :  { %4805 = vmatpush.bf16.msrb.mxu2 %v7519_v0  ;;  %v7540_v0 = vld [vmem:[#allocation5 + $0xa58] sm:$0xff] }
 0x136   :  { %4818 = vmatpush.bf16.msrb.mxu3 %v7527_v1  ;;  %v7871_v22 = vadd.f32 %v4566_v20, %v4554_v19  ;;  %v7548_v1 = vld [vmem:[#allocation5 + $0xa98] sm:$0xff]  ;;  %v7529_v19 = vld [vmem:[#allocation5 + $0xa00] sm:$0xff] }
 0x137   :  { %4780 = vmatpush.bf16.msrb.mxu0 %v7502_v2  ;;  %v7556_v2 = vld [vmem:[#allocation5 + $0xad8] sm:$0xff]  ;;  %v7537_v20 = vld [vmem:[#allocation5 + $0xa40] sm:$0xff] }
 0x138   :  { %4793 = vmatpush.bf16.msrb.mxu1 %v7510_v3  ;;  %v7584_v25 = vld [vmem:[#allocation5 + $0xbb8] sm:$0xff] }
 0x139   :  { %4806 = vmatpush.bf16.msrb.mxu2 %v7518_v4 }
 0x13a   :  { %4819 = vmatpush.bf16.msrb.mxu3 %v7526_v5 }
 0x13b   :  { %4781 = vmatpush.bf16.msrb.mxu0 %v7501_v8  ;;  %v4555_v34 = vpop.f32.mrf.mxu2  ;;  %v7531_v8 = vld [vmem:[#allocation5 + $0xa10] sm:$0xff] }
 0x13c   :  { %4794 = vmatpush.bf16.msrb.mxu1 %v7509_v9  ;;  %v4568_v37 = vpop.f32.mrf.mxu3  ;;  %v7539_v9 = vld [vmem:[#allocation5 + $0xa50] sm:$0xff] }
 0x13d   :  { %4807 = vmatpush.bf16.msrb.mxu2 %v7517_v11  ;;  %v7547_v11 = vld [vmem:[#allocation5 + $0xa90] sm:$0xff]  ;;  %v7582_v37 = vld [vmem:[#allocation5 + $0xba8] sm:$0xff] }
 0x13e   :  { %4820 = vmatpush.bf16.msrb.mxu3 %v7525_v12  ;;  %v7555_v12 = vld [vmem:[#allocation5 + $0xad0] sm:$0xff] }
 0x13f   :  { %4782 = vmatpush.bf16.msrb.mxu0 %v7500_v14  ;;  %v7538_v14 = vld [vmem:[#allocation5 + $0xa48] sm:$0xff]  ;;  %v7591_v34 = vld [vmem:[#allocation5 + $0xbf0] sm:$0xff] }
 0x140   :  { %4795 = vmatpush.bf16.msrb.mxu1 %v7508_v15  ;;  %v7546_v15 = vld [vmem:[#allocation5 + $0xa88] sm:$0xff] }
 0x141   :  { %4808 = vmatpush.bf16.msrb.mxu2 %v7516_v16  ;;  %v7554_v16 = vld [vmem:[#allocation5 + $0xac8] sm:$0xff] }
 0x142   :  { %4821 = vmatpush.bf16.msrb.mxu3 %v7524_v17 }
 0x143   :  { %4783 = vmatpush.bf16.msrb.mxu0 %v7499_v23  ;;  %v7568_v23 = vld [vmem:[#allocation5 + $0xb38] sm:$0xff] }
 0x144   :  { %4796 = vmatpush.bf16.msrb.mxu1 %v7507_v24  ;;  %v7576_v24 = vld [vmem:[#allocation5 + $0xb78] sm:$0xff] }
 0x145   :  { %4809 = vmatpush.bf16.msrb.mxu2 %v7515_v26  ;;  %v7592_v26 = vld [vmem:[#allocation5 + $0xbf8] sm:$0xff] }
 0x146   :  { %4822 = vmatpush.bf16.msrb.mxu3 %v7523_v27  ;;  %v1146_v27 = vld [vmem:[#allocation1] sm:$0xff] }
 0x147   :  { %4784 = vmatpush.bf16.msrb.mxu0 %v7498_v28  ;;  %v1148_v28 = vld [vmem:[#allocation1 + $0x12] sm:$0xff] }
 0x148   :  { %4797 = vmatpush.bf16.msrb.mxu1 %v7506_v29  ;;  %v1147_v29 = vld [vmem:[#allocation1 + $0x9] sm:$0xff] }
 0x149   :  { %4810 = vmatpush.bf16.msrb.mxu2 %v7514_v30  ;;  %v1149_v30 = vld [vmem:[#allocation1 + $0x1b] sm:$0xff] }
 0x14a   :  { %4823 = vmatpush.bf16.msrb.mxu3 %v7522_v31  ;;  %v7567_v31 = vld [vmem:[#allocation5 + $0xb30] sm:$0xff] }
 0x14b   :  { %4785 = vmatpush.bf16.msrb.mxu0 %v7497_v39  ;;  %v4579_v55 = vpop.f32.mrf.mxu0 }
 0x14c   :  { %4798 = vmatpush.bf16.msrb.mxu1 %v7505_v40  ;;  %v4580_v56 = vadd.f32 %v4579_v55, %v7871_v22  ;;  %v4592_v59 = vpop.f32.mrf.mxu1  ;;  %v7553_v22 = vld [vmem:[#allocation5 + $0xac0] sm:$0xff] }
 0x14d   :  { %4811 = vmatpush.bf16.msrb.mxu2 %v7513_v41  ;;  %v7565_v41 = vld [vmem:[#allocation5 + $0xb20] sm:$0xff] }
 0x14e   :  { %4824 = vmatpush.bf16.msrb.mxu3 %v7521_v42  ;;  %4786 = vmatmul.bf16.vlgmr.msrb.gmra.mxu0 %v1140_v32  ;;  %v4593_v62 = vadd.f32 %v4592_v59, %v4580_v56  ;;  %v7575_v32 = vld [vmem:[#allocation5 + $0xb70] sm:$0xff]  ;;  %v7573_v42 = vld [vmem:[#allocation5 + $0xb60] sm:$0xff] }
 0x14f   :  { %4830 = vmatpush.bf16.msra.mxu0 %v7536_v43  ;;  %4799 = vmatmul.bf16.vlgmr.msrb.gmra.mxu1 %v1141_v35  ;;  %v7566_v35 = vld [vmem:[#allocation5 + $0xb28] sm:$0xff]  ;;  %v7563_v56 = vld [vmem:[#allocation5 + $0xb10] sm:$0xff] }
 0x150   :  { %4843 = vmatpush.bf16.msra.mxu1 %v7544_v44  ;;  %4812 = vmatmul.bf16.vlgmr.msrb.gmra.mxu2 %v1142_v33  ;;  %v7583_v33 = vld [vmem:[#allocation5 + $0xbb0] sm:$0xff]  ;;  %v7581_v44 = vld [vmem:[#allocation5 + $0xba0] sm:$0xff] }
 0x151   :  { %4856 = vmatpush.bf16.msra.mxu2 %v7552_v45  ;;  %4825 = vmatmul.bf16.vlgmr.msrb.gmra.mxu3 %v1143_v36  ;;  %v7574_v36 = vld [vmem:[#allocation5 + $0xb68] sm:$0xff]  ;;  %v7589_v45 = vld [vmem:[#allocation5 + $0xbe0] sm:$0xff]  ;;  %v7579_v59 = vld [vmem:[#allocation5 + $0xb90] sm:$0xff] }
 0x152   :  { %4869 = vmatpush.bf16.msra.mxu3 %v7560_v46 }
 0x153   :  { %4831 = vmatpush.bf16.msra.mxu0 %v7535_v47  ;;  %v4605_v3 = vpop.f32.mrf.mxu2  ;;  %v4581_v6 = vpop.f32.mrf.mxu0  ;;  %v7564_v47 = vld [vmem:[#allocation5 + $0xb18] sm:$0xff] }
 0x154   :  { %4844 = vmatpush.bf16.msra.mxu1 %v7543_v48  ;;  %v4606_v4 = vadd.f32 %v4605_v3, %v4593_v62  ;;  %v4618_v5 = vpop.f32.mrf.mxu3  ;;  %v4594_v10 = vpop.f32.mrf.mxu1  ;;  %v7572_v48 = vld [vmem:[#allocation5 + $0xb58] sm:$0xff]  ;;  %v7570_v62 = vld [vmem:[#allocation5 + $0xb48] sm:$0xff] }
 0x155   :  { %4857 = vmatpush.bf16.msra.mxu2 %v7551_v49  ;;  %v7580_v49 = vld [vmem:[#allocation5 + $0xb98] sm:$0xff]  ;;  %v7577_v10 = vld [vmem:[#allocation5 + $0xb80] sm:$0xff] }
 0x156   :  { %4870 = vmatpush.bf16.msra.mxu3 %v7559_v50  ;;  %v4619_v7 = vadd.f32 %v4618_v5, %v4606_v4  ;;  %v7588_v50 = vld [vmem:[#allocation5 + $0xbd8] sm:$0xff]  ;;  %v1151_v4 = vld [vmem:[#allocation1 + $0x2d] sm:$0xff] }
 0x157   :  { %4832 = vmatpush.bf16.msra.mxu0 %v7534_v51  ;;  %v1153_v5 = vld [vmem:[#allocation1 + $0x3f] sm:$0xff] }
 0x158   :  { %4845 = vmatpush.bf16.msra.mxu1 %v7542_v52 }
 0x159   :  { %4858 = vmatpush.bf16.msra.mxu2 %v7550_v53 }
 0x15a   :  { %4871 = vmatpush.bf16.msra.mxu3 %v7558_v54 }
 0x15b   :  { %4833 = vmatpush.bf16.msra.mxu0 %v7533_v57  ;;  %v4607_v17 = vpop.f32.mrf.mxu2  ;;  %v7571_v57 = vld [vmem:[#allocation5 + $0xb50] sm:$0xff] }
 0x15c   :  { %4846 = vmatpush.bf16.msra.mxu1 %v7541_v58  ;;  %v4620_v18 = vpop.f32.mrf.mxu3  ;;  %v7607_v17 = vld [vmem:[#allocation5 + $0xc70] sm:$0xff] }
 0x15d   :  { %4859 = vmatpush.bf16.msra.mxu2 %v7549_v60  ;;  %v7587_v60 = vld [vmem:[#allocation5 + $0xbd0] sm:$0xff] }
 0x15e   :  { %4872 = vmatpush.bf16.msra.mxu3 %v7557_v61  ;;  %v7562_v61 = vld [vmem:[#allocation5 + $0xb08] sm:$0xff]  ;;  %v7615_v18 = vld [vmem:[#allocation5 + $0xcb0] sm:$0xff] }
 0x15f   :  { %4834 = vmatpush.bf16.msra.mxu0 %v7532_v63  ;;  %v7578_v63 = vld [vmem:[#allocation5 + $0xb88] sm:$0xff] }
 0x160   :  { %4847 = vmatpush.bf16.msra.mxu1 %v7540_v0  ;;  %v7586_v0 = vld [vmem:[#allocation5 + $0xbc8] sm:$0xff] }
 0x161   :  { %4860 = vmatpush.bf16.msra.mxu2 %v7548_v1  ;;  %v1150_v1 = vld [vmem:[#allocation1 + $0x24] sm:$0xff] }
 0x162   :  { %4873 = vmatpush.bf16.msra.mxu3 %v7556_v2  ;;  %v1152_v2 = vld [vmem:[#allocation1 + $0x36] sm:$0xff] }
 0x163   :  { %4835 = vmatpush.bf16.msra.mxu0 %v7531_v8  ;;  %v7561_v8 = vld [vmem:[#allocation5 + $0xb00] sm:$0xff] }
 0x164   :  { %4848 = vmatpush.bf16.msra.mxu1 %v7539_v9  ;;  %v7569_v9 = vld [vmem:[#allocation5 + $0xb40] sm:$0xff] }
 0x165   :  { %4861 = vmatpush.bf16.msra.mxu2 %v7547_v11  ;;  %v7585_v11 = vld [vmem:[#allocation5 + $0xbc0] sm:$0xff] }
 0x166   :  { %4874 = vmatpush.bf16.msra.mxu3 %v7555_v12  ;;  %v7600_v12 = vld [vmem:[#allocation5 + $0xc38] sm:$0xff] }
 0x167   :  { %4836 = vmatpush.bf16.msra.mxu0 %v7530_v13  ;;  %v7608_v13 = vld [vmem:[#allocation5 + $0xc78] sm:$0xff] }
 0x168   :  { %4849 = vmatpush.bf16.msra.mxu1 %v7538_v14  ;;  %v7616_v14 = vld [vmem:[#allocation5 + $0xcb8] sm:$0xff] }
 0x169   :  { %4862 = vmatpush.bf16.msra.mxu2 %v7546_v15  ;;  %v7624_v15 = vld [vmem:[#allocation5 + $0xcf8] sm:$0xff] }
 0x16a   :  { %4875 = vmatpush.bf16.msra.mxu3 %v7554_v16  ;;  %v7599_v16 = vld [vmem:[#allocation5 + $0xc30] sm:$0xff] }
 0x16b   :  { %4837 = vmatpush.bf16.msra.mxu0 %v7529_v19  ;;  %v4631_v39 = vpop.f32.mrf.mxu0  ;;  %v7623_v19 = vld [vmem:[#allocation5 + $0xcf0] sm:$0xff] }
 0x16c   :  { %4850 = vmatpush.bf16.msra.mxu1 %v7537_v20  ;;  %v4632_v40 = vadd.f32 %v4631_v39, %v4619_v7  ;;  %v4644_v43 = vpop.f32.mrf.mxu1  ;;  %v64_v7 = vld [vmem:[#allocation2 + $0x30] sm:$0xff]  ;;  %v7598_v20 = vld [vmem:[#allocation5 + $0xc28] sm:$0xff] }
 0x16d   :  { %4863 = vmatpush.bf16.msra.mxu2 %v7545_v21  ;;  %1155 = vst [vmem:[#allocation1] ss:$9 sm:$0xff] %v64_v7  ;;  %v7606_v21 = vld [vmem:[#allocation5 + $0xc68] sm:$0xff] }
 0x16e   :  { %4876 = vmatpush.bf16.msra.mxu3 %v7553_v22  ;;  %4838 = vmatmul.bf16.vlgmr.msra.gmra.mxu0 %v1146_v27  ;;  %v4645_v46 = vadd.f32 %v4644_v43, %v4632_v40  ;;  %v7614_v22 = vld [vmem:[#allocation5 + $0xca8] sm:$0xff]  ;;  %v7605_v27 = vld [vmem:[#allocation5 + $0xc60] sm:$0xff] }
 0x16f   :  { %4882 = vmatpush.bf16.msrb.mxu0 %v7568_v23  ;;  %4851 = vmatmul.bf16.vlgmr.msra.gmra.mxu1 %v1147_v29  ;;  %v7622_v23 = vld [vmem:[#allocation5 + $0xce8] sm:$0xff]  ;;  %v7613_v29 = vld [vmem:[#allocation5 + $0xca0] sm:$0xff] }
 0x170   :  { %4895 = vmatpush.bf16.msrb.mxu1 %v7576_v24  ;;  %4864 = vmatmul.bf16.vlgmr.msra.gmra.mxu2 %v1148_v28  ;;  %v7654_v7 = vld [vmem:[#allocation5 + $0xde8] sm:$0xff] }
 0x171   :  { %4908 = vmatpush.bf16.msrb.mxu2 %v7584_v25  ;;  %4877 = vmatmul.bf16.vlgmr.msra.gmra.mxu3 %v1149_v30  ;;  %v7621_v30 = vld [vmem:[#allocation5 + $0xce0] sm:$0xff] }
 0x172   :  { %4921 = vmatpush.bf16.msrb.mxu3 %v7592_v26  ;;  %v7597_v26 = vld [vmem:[#allocation5 + $0xc20] sm:$0xff] }
 0x173   :  { %4883 = vmatpush.bf16.msrb.mxu0 %v7567_v31  ;;  %v4657_v51 = vpop.f32.mrf.mxu2  ;;  %v4633_v54 = vpop.f32.mrf.mxu0 }
 0x174   :  { %4896 = vmatpush.bf16.msrb.mxu1 %v7575_v32  ;;  %v4658_v52 = vadd.f32 %v4657_v51, %v4645_v46  ;;  %v4670_v53 = vpop.f32.mrf.mxu3  ;;  %v4646_v58 = vpop.f32.mrf.mxu1  ;;  %v7596_v32 = vld [vmem:[#allocation5 + $0xc18] sm:$0xff]  ;;  %v7594_v46 = vld [vmem:[#allocation5 + $0xc08] sm:$0xff]  ;;  %v7609_v54 = vld [vmem:[#allocation5 + $0xc80] sm:$0xff] }
 0x175   :  { %4909 = vmatpush.bf16.msrb.mxu2 %v7583_v33  ;;  %v7604_v33 = vld [vmem:[#allocation5 + $0xc58] sm:$0xff] }
 0x176   :  { %4922 = vmatpush.bf16.msrb.mxu3 %v7591_v34  ;;  %v7874_v55 = vadd.f32 %v4670_v53, %v4658_v52  ;;  %v7612_v34 = vld [vmem:[#allocation5 + $0xc98] sm:$0xff]  ;;  %v7593_v52 = vld [vmem:[#allocation5 + $0xc00] sm:$0xff] }
 0x177   :  { %4884 = vmatpush.bf16.msrb.mxu0 %v7566_v35  ;;  %v7620_v35 = vld [vmem:[#allocation5 + $0xcd8] sm:$0xff]  ;;  %v7601_v53 = vld [vmem:[#allocation5 + $0xc40] sm:$0xff] }
 0x178   :  { %4897 = vmatpush.bf16.msrb.mxu1 %v7574_v36  ;;  %v7648_v58 = vld [vmem:[#allocation5 + $0xdb8] sm:$0xff] }
 0x179   :  { %4910 = vmatpush.bf16.msrb.mxu2 %v7582_v37 }
 0x17a   :  { %4923 = vmatpush.bf16.msrb.mxu3 %v7590_v38 }
 0x17b   :  { %4885 = vmatpush.bf16.msrb.mxu0 %v7565_v41  ;;  %v4659_v3 = vpop.f32.mrf.mxu2  ;;  %v7595_v41 = vld [vmem:[#allocation5 + $0xc10] sm:$0xff] }
 0x17c   :  { %4898 = vmatpush.bf16.msrb.mxu1 %v7573_v42  ;;  %v4672_v6 = vpop.f32.mrf.mxu3  ;;  %v7603_v42 = vld [vmem:[#allocation5 + $0xc50] sm:$0xff] }
 0x17d   :  { %4911 = vmatpush.bf16.msrb.mxu2 %v7581_v44  ;;  %v7611_v44 = vld [vmem:[#allocation5 + $0xc90] sm:$0xff]  ;;  %v7646_v6 = vld [vmem:[#allocation5 + $0xda8] sm:$0xff] }
 0x17e   :  { %4924 = vmatpush.bf16.msrb.mxu3 %v7589_v45  ;;  %v7619_v45 = vld [vmem:[#allocation5 + $0xcd0] sm:$0xff] }
 0x17f   :  { %4886 = vmatpush.bf16.msrb.mxu0 %v7564_v47  ;;  %v7602_v47 = vld [vmem:[#allocation5 + $0xc48] sm:$0xff]  ;;  %v7655_v3 = vld [vmem:[#allocation5 + $0xdf0] sm:$0xff] }
 0x180   :  { %4899 = vmatpush.bf16.msrb.mxu1 %v7572_v48  ;;  %v7610_v48 = vld [vmem:[#allocation5 + $0xc88] sm:$0xff] }
 0x181   :  { %4912 = vmatpush.bf16.msrb.mxu2 %v7580_v49  ;;  %v7618_v49 = vld [vmem:[#allocation5 + $0xcc8] sm:$0xff] }
 0x182   :  { %4925 = vmatpush.bf16.msrb.mxu3 %v7588_v50 }
 0x183   :  { %4887 = vmatpush.bf16.msrb.mxu0 %v7563_v56  ;;  %v7632_v56 = vld [vmem:[#allocation5 + $0xd38] sm:$0xff] }
 0x184   :  { %4900 = vmatpush.bf16.msrb.mxu1 %v7571_v57  ;;  %v7640_v57 = vld [vmem:[#allocation5 + $0xd78] sm:$0xff] }
 0x185   :  { %4913 = vmatpush.bf16.msrb.mxu2 %v7579_v59  ;;  %v7656_v59 = vld [vmem:[#allocation5 + $0xdf8] sm:$0xff] }
 0x186   :  { %4926 = vmatpush.bf16.msrb.mxu3 %v7587_v60  ;;  %v1156_v60 = vld [vmem:[#allocation1] sm:$0xff] }
 0x187   :  { %4888 = vmatpush.bf16.msrb.mxu0 %v7562_v61  ;;  %v1158_v61 = vld [vmem:[#allocation1 + $0x12] sm:$0xff] }
 0x188   :  { %4901 = vmatpush.bf16.msrb.mxu1 %v7570_v62  ;;  %v1157_v62 = vld [vmem:[#allocation1 + $0x9] sm:$0xff] }
 0x189   :  { %4914 = vmatpush.bf16.msrb.mxu2 %v7578_v63  ;;  %v1159_v63 = vld [vmem:[#allocation1 + $0x1b] sm:$0xff] }
 0x18a   :  { %4927 = vmatpush.bf16.msrb.mxu3 %v7586_v0  ;;  %v7631_v0 = vld [vmem:[#allocation5 + $0xd30] sm:$0xff] }
 0x18b   :  { %4889 = vmatpush.bf16.msrb.mxu0 %v7561_v8  ;;  %v4683_v24 = vpop.f32.mrf.mxu0 }
 0x18c   :  { %4902 = vmatpush.bf16.msrb.mxu1 %v7569_v9  ;;  %v4684_v25 = vadd.f32 %v4683_v24, %v7874_v55  ;;  %v4696_v28 = vpop.f32.mrf.mxu1  ;;  %v7617_v55 = vld [vmem:[#allocation5 + $0xcc0] sm:$0xff] }
 0x18d   :  { %4915 = vmatpush.bf16.msrb.mxu2 %v7577_v10  ;;  %v7629_v10 = vld [vmem:[#allocation5 + $0xd20] sm:$0xff] }
 0x18e   :  { %4928 = vmatpush.bf16.msrb.mxu3 %v7585_v11  ;;  %4890 = vmatmul.bf16.vlgmr.msrb.gmra.mxu0 %v1150_v1  ;;  %v4697_v31 = vadd.f32 %v4696_v28, %v4684_v25  ;;  %v7639_v1 = vld [vmem:[#allocation5 + $0xd70] sm:$0xff]  ;;  %v7637_v11 = vld [vmem:[#allocation5 + $0xd60] sm:$0xff] }
 0x18f   :  { %4934 = vmatpush.bf16.msra.mxu0 %v7600_v12  ;;  %4903 = vmatmul.bf16.vlgmr.msrb.gmra.mxu1 %v1151_v4  ;;  %v7630_v4 = vld [vmem:[#allocation5 + $0xd28] sm:$0xff]  ;;  %v7627_v25 = vld [vmem:[#allocation5 + $0xd10] sm:$0xff] }
 0x190   :  { %4947 = vmatpush.bf16.msra.mxu1 %v7608_v13  ;;  %4916 = vmatmul.bf16.vlgmr.msrb.gmra.mxu2 %v1152_v2  ;;  %v7647_v2 = vld [vmem:[#allocation5 + $0xdb0] sm:$0xff]  ;;  %v7645_v13 = vld [vmem:[#allocation5 + $0xda0] sm:$0xff] }
 0x191   :  { %4960 = vmatpush.bf16.msra.mxu2 %v7616_v14  ;;  %4929 = vmatmul.bf16.vlgmr.msrb.gmra.mxu3 %v1153_v5  ;;  %v7638_v5 = vld [vmem:[#allocation5 + $0xd68] sm:$0xff]  ;;  %v7653_v14 = vld [vmem:[#allocation5 + $0xde0] sm:$0xff]  ;;  %v7643_v28 = vld [vmem:[#allocation5 + $0xd90] sm:$0xff] }
 0x192   :  { %4973 = vmatpush.bf16.msra.mxu3 %v7624_v15 }
 0x193   :  { %4935 = vmatpush.bf16.msra.mxu0 %v7599_v16  ;;  %v4709_v36 = vpop.f32.mrf.mxu2  ;;  %v4685_v39 = vpop.f32.mrf.mxu0  ;;  %v7628_v16 = vld [vmem:[#allocation5 + $0xd18] sm:$0xff] }
 0x194   :  { %4948 = vmatpush.bf16.msra.mxu1 %v7607_v17  ;;  %v4710_v37 = vadd.f32 %v4709_v36, %v4697_v31  ;;  %v4722_v38 = vpop.f32.mrf.mxu3  ;;  %v4698_v43 = vpop.f32.mrf.mxu1  ;;  %v7636_v17 = vld [vmem:[#allocation5 + $0xd58] sm:$0xff]  ;;  %v7634_v31 = vld [vmem:[#allocation5 + $0xd48] sm:$0xff] }
 0x195   :  { %4961 = vmatpush.bf16.msra.mxu2 %v7615_v18  ;;  %v7644_v18 = vld [vmem:[#allocation5 + $0xd98] sm:$0xff]  ;;  %v7641_v43 = vld [vmem:[#allocation5 + $0xd80] sm:$0xff] }
 0x196   :  { %4974 = vmatpush.bf16.msra.mxu3 %v7623_v19  ;;  %v4723_v40 = vadd.f32 %v4722_v38, %v4710_v37  ;;  %v7652_v19 = vld [vmem:[#allocation5 + $0xdd8] sm:$0xff]  ;;  %v1161_v37 = vld [vmem:[#allocation1 + $0x2d] sm:$0xff] }
 0x197   :  { %4936 = vmatpush.bf16.msra.mxu0 %v7598_v20  ;;  %v1163_v38 = vld [vmem:[#allocation1 + $0x3f] sm:$0xff] }
 0x198   :  { %4949 = vmatpush.bf16.msra.mxu1 %v7606_v21 }
 0x199   :  { %4962 = vmatpush.bf16.msra.mxu2 %v7614_v22 }
 0x19a   :  { %4975 = vmatpush.bf16.msra.mxu3 %v7622_v23 }
 0x19b   :  { %4937 = vmatpush.bf16.msra.mxu0 %v7597_v26  ;;  %v4711_v50 = vpop.f32.mrf.mxu2  ;;  %v7635_v26 = vld [vmem:[#allocation5 + $0xd50] sm:$0xff] }
 0x19c   :  { %4950 = vmatpush.bf16.msra.mxu1 %v7605_v27  ;;  %v4724_v51 = vpop.f32.mrf.mxu3  ;;  %v7671_v50 = vld [vmem:[#allocation5 + $0xe70] sm:$0xff] }
 0x19d   :  { %4963 = vmatpush.bf16.msra.mxu2 %v7613_v29  ;;  %v7651_v29 = vld [vmem:[#allocation5 + $0xdd0] sm:$0xff] }
 0x19e   :  { %4976 = vmatpush.bf16.msra.mxu3 %v7621_v30  ;;  %v7626_v30 = vld [vmem:[#allocation5 + $0xd08] sm:$0xff]  ;;  %v7679_v51 = vld [vmem:[#allocation5 + $0xeb0] sm:$0xff] }
 0x19f   :  { %4938 = vmatpush.bf16.msra.mxu0 %v7596_v32  ;;  %v7642_v32 = vld [vmem:[#allocation5 + $0xd88] sm:$0xff] }
 0x1a0   :  { %4951 = vmatpush.bf16.msra.mxu1 %v7604_v33  ;;  %v7650_v33 = vld [vmem:[#allocation5 + $0xdc8] sm:$0xff] }
 0x1a1   :  { %4964 = vmatpush.bf16.msra.mxu2 %v7612_v34  ;;  %v1160_v34 = vld [vmem:[#allocation1 + $0x24] sm:$0xff] }
 0x1a2   :  { %4977 = vmatpush.bf16.msra.mxu3 %v7620_v35  ;;  %v1162_v35 = vld [vmem:[#allocation1 + $0x36] sm:$0xff] }
 0x1a3   :  { %4939 = vmatpush.bf16.msra.mxu0 %v7595_v41  ;;  %v7625_v41 = vld [vmem:[#allocation5 + $0xd00] sm:$0xff] }
 0x1a4   :  { %4952 = vmatpush.bf16.msra.mxu1 %v7603_v42  ;;  %v7633_v42 = vld [vmem:[#allocation5 + $0xd40] sm:$0xff] }
 0x1a5   :  { %4965 = vmatpush.bf16.msra.mxu2 %v7611_v44  ;;  %v7649_v44 = vld [vmem:[#allocation5 + $0xdc0] sm:$0xff] }
 0x1a6   :  { %4978 = vmatpush.bf16.msra.mxu3 %v7619_v45  ;;  %v7664_v45 = vld [vmem:[#allocation5 + $0xe38] sm:$0xff] }
 0x1a7   :  { %4940 = vmatpush.bf16.msra.mxu0 %v7594_v46  ;;  %v7672_v46 = vld [vmem:[#allocation5 + $0xe78] sm:$0xff] }
 0x1a8   :  { %4953 = vmatpush.bf16.msra.mxu1 %v7602_v47  ;;  %v7680_v47 = vld [vmem:[#allocation5 + $0xeb8] sm:$0xff] }
 0x1a9   :  { %4966 = vmatpush.bf16.msra.mxu2 %v7610_v48  ;;  %v7688_v48 = vld [vmem:[#allocation5 + $0xef8] sm:$0xff] }
 0x1aa   :  { %4979 = vmatpush.bf16.msra.mxu3 %v7618_v49  ;;  %v7663_v49 = vld [vmem:[#allocation5 + $0xe30] sm:$0xff] }
 0x1ab   :  { %4941 = vmatpush.bf16.msra.mxu0 %v7593_v52  ;;  %v4735_v8 = vpop.f32.mrf.mxu0  ;;  %v7687_v52 = vld [vmem:[#allocation5 + $0xef0] sm:$0xff] }
 0x1ac   :  { %4954 = vmatpush.bf16.msra.mxu1 %v7601_v53  ;;  %v4736_v9 = vadd.f32 %v4735_v8, %v4723_v40  ;;  %v4748_v12 = vpop.f32.mrf.mxu1  ;;  %v65_v40 = vld [vmem:[#allocation2 + $0x38] sm:$0xff]  ;;  %v7662_v53 = vld [vmem:[#allocation5 + $0xe28] sm:$0xff] }
 0x1ad   :  { %4967 = vmatpush.bf16.msra.mxu2 %v7609_v54  ;;  %1165 = vst [vmem:[#allocation1] ss:$9 sm:$0xff] %v65_v40  ;;  %v7670_v54 = vld [vmem:[#allocation5 + $0xe68] sm:$0xff] }
 0x1ae   :  { %4980 = vmatpush.bf16.msra.mxu3 %v7617_v55  ;;  %4942 = vmatmul.bf16.vlgmr.msra.gmra.mxu0 %v1156_v60  ;;  %v4749_v15 = vadd.f32 %v4748_v12, %v4736_v9  ;;  %v7678_v55 = vld [vmem:[#allocation5 + $0xea8] sm:$0xff]  ;;  %v7669_v60 = vld [vmem:[#allocation5 + $0xe60] sm:$0xff] }
 0x1af   :  { %4986 = vmatpush.bf16.msrb.mxu0 %v7632_v56  ;;  %4955 = vmatmul.bf16.vlgmr.msra.gmra.mxu1 %v1157_v62  ;;  %v7686_v56 = vld [vmem:[#allocation5 + $0xee8] sm:$0xff]  ;;  %v7677_v62 = vld [vmem:[#allocation5 + $0xea0] sm:$0xff] }
 0x1b0   :  { %4999 = vmatpush.bf16.msrb.mxu1 %v7640_v57  ;;  %4968 = vmatmul.bf16.vlgmr.msra.gmra.mxu2 %v1158_v61  ;;  %v7718_v40 = vld [vmem:[#allocation5 + $0xfe8] sm:$0xff] }
 0x1b1   :  { %5012 = vmatpush.bf16.msrb.mxu2 %v7648_v58  ;;  %4981 = vmatmul.bf16.vlgmr.msra.gmra.mxu3 %v1159_v63  ;;  %v7685_v63 = vld [vmem:[#allocation5 + $0xee0] sm:$0xff] }
 0x1b2   :  { %5025 = vmatpush.bf16.msrb.mxu3 %v7656_v59  ;;  %v7661_v59 = vld [vmem:[#allocation5 + $0xe20] sm:$0xff] }
 0x1b3   :  { %4987 = vmatpush.bf16.msrb.mxu0 %v7631_v0  ;;  %v4761_v20 = vpop.f32.mrf.mxu2  ;;  %v4737_v23 = vpop.f32.mrf.mxu0 }
 0x1b4   :  { %5000 = vmatpush.bf16.msrb.mxu1 %v7639_v1  ;;  %v4762_v21 = vadd.f32 %v4761_v20, %v4749_v15  ;;  %v4774_v22 = vpop.f32.mrf.mxu3  ;;  %v4750_v27 = vpop.f32.mrf.mxu1  ;;  %v7660_v1 = vld [vmem:[#allocation5 + $0xe18] sm:$0xff]  ;;  %v7658_v15 = vld [vmem:[#allocation5 + $0xe08] sm:$0xff]  ;;  %v7673_v23 = vld [vmem:[#allocation5 + $0xe80] sm:$0xff] }
 0x1b5   :  { %5013 = vmatpush.bf16.msrb.mxu2 %v7647_v2  ;;  %v7668_v2 = vld [vmem:[#allocation5 + $0xe58] sm:$0xff] }
 0x1b6   :  { %5026 = vmatpush.bf16.msrb.mxu3 %v7655_v3  ;;  %v7877_v24 = vadd.f32 %v4774_v22, %v4762_v21  ;;  %v7676_v3 = vld [vmem:[#allocation5 + $0xe98] sm:$0xff]  ;;  %v7657_v21 = vld [vmem:[#allocation5 + $0xe00] sm:$0xff] }
 0x1b7   :  { %4988 = vmatpush.bf16.msrb.mxu0 %v7630_v4  ;;  %v7684_v4 = vld [vmem:[#allocation5 + $0xed8] sm:$0xff]  ;;  %v7665_v22 = vld [vmem:[#allocation5 + $0xe40] sm:$0xff] }
 0x1b8   :  { %5001 = vmatpush.bf16.msrb.mxu1 %v7638_v5  ;;  %v7712_v27 = vld [vmem:[#allocation5 + $0xfb8] sm:$0xff] }
 0x1b9   :  { %5014 = vmatpush.bf16.msrb.mxu2 %v7646_v6 }
 0x1ba   :  { %5027 = vmatpush.bf16.msrb.mxu3 %v7654_v7 }
 0x1bb   :  { %4989 = vmatpush.bf16.msrb.mxu0 %v7629_v10  ;;  %v4763_v36 = vpop.f32.mrf.mxu2  ;;  %v7659_v10 = vld [vmem:[#allocation5 + $0xe10] sm:$0xff] }
 0x1bc   :  { %5002 = vmatpush.bf16.msrb.mxu1 %v7637_v11  ;;  %v4776_v39 = vpop.f32.mrf.mxu3  ;;  %v7667_v11 = vld [vmem:[#allocation5 + $0xe50] sm:$0xff] }
 0x1bd   :  { %5015 = vmatpush.bf16.msrb.mxu2 %v7645_v13  ;;  %v7675_v13 = vld [vmem:[#allocation5 + $0xe90] sm:$0xff]  ;;  %v7710_v39 = vld [vmem:[#allocation5 + $0xfa8] sm:$0xff] }
 0x1be   :  { %5028 = vmatpush.bf16.msrb.mxu3 %v7653_v14  ;;  %v7683_v14 = vld [vmem:[#allocation5 + $0xed0] sm:$0xff] }
 0x1bf   :  { %4990 = vmatpush.bf16.msrb.mxu0 %v7628_v16  ;;  %v7666_v16 = vld [vmem:[#allocation5 + $0xe48] sm:$0xff]  ;;  %v7719_v36 = vld [vmem:[#allocation5 + $0xff0] sm:$0xff] }
 0x1c0   :  { %5003 = vmatpush.bf16.msrb.mxu1 %v7636_v17  ;;  %v7674_v17 = vld [vmem:[#allocation5 + $0xe88] sm:$0xff] }
 0x1c1   :  { %5016 = vmatpush.bf16.msrb.mxu2 %v7644_v18  ;;  %v7682_v18 = vld [vmem:[#allocation5 + $0xec8] sm:$0xff] }
 0x1c2   :  { %5029 = vmatpush.bf16.msrb.mxu3 %v7652_v19 }
 0x1c3   :  { %4991 = vmatpush.bf16.msrb.mxu0 %v7627_v25  ;;  %v7696_v25 = vld [vmem:[#allocation5 + $0xf38] sm:$0xff] }
 0x1c4   :  { %5004 = vmatpush.bf16.msrb.mxu1 %v7635_v26  ;;  %v7704_v26 = vld [vmem:[#allocation5 + $0xf78] sm:$0xff] }
 0x1c5   :  { %5017 = vmatpush.bf16.msrb.mxu2 %v7643_v28  ;;  %v7720_v28 = vld [vmem:[#allocation5 + $0xff8] sm:$0xff] }
 0x1c6   :  { %5030 = vmatpush.bf16.msrb.mxu3 %v7651_v29  ;;  %v1166_v29 = vld [vmem:[#allocation1] sm:$0xff] }
 0x1c7   :  { %4992 = vmatpush.bf16.msrb.mxu0 %v7626_v30  ;;  %v1168_v30 = vld [vmem:[#allocation1 + $0x12] sm:$0xff] }
 0x1c8   :  { %5005 = vmatpush.bf16.msrb.mxu1 %v7634_v31  ;;  %v1167_v31 = vld [vmem:[#allocation1 + $0x9] sm:$0xff] }
 0x1c9   :  { %5018 = vmatpush.bf16.msrb.mxu2 %v7642_v32  ;;  %v1169_v32 = vld [vmem:[#allocation1 + $0x1b] sm:$0xff] }
 0x1ca   :  { %5031 = vmatpush.bf16.msrb.mxu3 %v7650_v33  ;;  %v7695_v33 = vld [vmem:[#allocation5 + $0xf30] sm:$0xff] }
 0x1cb   :  { %4993 = vmatpush.bf16.msrb.mxu0 %v7625_v41  ;;  %v4787_v57 = vpop.f32.mrf.mxu0 }
 0x1cc   :  { %5006 = vmatpush.bf16.msrb.mxu1 %v7633_v42  ;;  %v4788_v58 = vadd.f32 %v4787_v57, %v7877_v24  ;;  %v4800_v61 = vpop.f32.mrf.mxu1  ;;  %v7681_v24 = vld [vmem:[#allocation5 + $0xec0] sm:$0xff] }
 0x1cd   :  { %5019 = vmatpush.bf16.msrb.mxu2 %v7641_v43  ;;  %v7693_v43 = vld [vmem:[#allocation5 + $0xf20] sm:$0xff] }
 0x1ce   :  { %5032 = vmatpush.bf16.msrb.mxu3 %v7649_v44  ;;  %4994 = vmatmul.bf16.vlgmr.msrb.gmra.mxu0 %v1160_v34  ;;  %v4801_v0 = vadd.f32 %v4800_v61, %v4788_v58  ;;  %v7703_v34 = vld [vmem:[#allocation5 + $0xf70] sm:$0xff]  ;;  %v7701_v44 = vld [vmem:[#allocation5 + $0xf60] sm:$0xff] }
 0x1cf   :  { %5038 = vmatpush.bf16.msra.mxu0 %v7664_v45  ;;  %5007 = vmatmul.bf16.vlgmr.msrb.gmra.mxu1 %v1161_v37  ;;  %v7694_v37 = vld [vmem:[#allocation5 + $0xf28] sm:$0xff]  ;;  %v7691_v58 = vld [vmem:[#allocation5 + $0xf10] sm:$0xff] }
 0x1d0   :  { %5051 = vmatpush.bf16.msra.mxu1 %v7672_v46  ;;  %5020 = vmatmul.bf16.vlgmr.msrb.gmra.mxu2 %v1162_v35  ;;  %v7711_v35 = vld [vmem:[#allocation5 + $0xfb0] sm:$0xff]  ;;  %v7709_v46 = vld [vmem:[#allocation5 + $0xfa0] sm:$0xff] }
 0x1d1   :  { %5064 = vmatpush.bf16.msra.mxu2 %v7680_v47  ;;  %5033 = vmatmul.bf16.vlgmr.msrb.gmra.mxu3 %v1163_v38  ;;  %v7702_v38 = vld [vmem:[#allocation5 + $0xf68] sm:$0xff]  ;;  %v7717_v47 = vld [vmem:[#allocation5 + $0xfe0] sm:$0xff]  ;;  %v7707_v61 = vld [vmem:[#allocation5 + $0xf90] sm:$0xff] }
 0x1d2   :  { %5077 = vmatpush.bf16.msra.mxu3 %v7688_v48 }
 0x1d3   :  { %5039 = vmatpush.bf16.msra.mxu0 %v7663_v49  ;;  %v4813_v5 = vpop.f32.mrf.mxu2  ;;  %v4789_v8 = vpop.f32.mrf.mxu0  ;;  %v7692_v49 = vld [vmem:[#allocation5 + $0xf18] sm:$0xff] }
 0x1d4   :  { %5052 = vmatpush.bf16.msra.mxu1 %v7671_v50  ;;  %v4814_v6 = vadd.f32 %v4813_v5, %v4801_v0  ;;  %v4826_v7 = vpop.f32.mrf.mxu3  ;;  %v4802_v12 = vpop.f32.mrf.mxu1  ;;  %v7700_v50 = vld [vmem:[#allocation5 + $0xf58] sm:$0xff]  ;;  %v7698_v0 = vld [vmem:[#allocation5 + $0xf48] sm:$0xff]  ;;  %v7689_v5 = vld [vmem:[#allocation5 + $0xf00] sm:$0xff] }
 0x1d5   :  { %5065 = vmatpush.bf16.msra.mxu2 %v7679_v51  ;;  %v7708_v51 = vld [vmem:[#allocation5 + $0xf98] sm:$0xff]  ;;  %v7713_v8 = vld [vmem:[#allocation5 + $0xfc0] sm:$0xff] }
 0x1d6   :  { %5078 = vmatpush.bf16.msra.mxu3 %v7687_v52  ;;  %v4827_v9 = vadd.f32 %v4826_v7, %v4814_v6  ;;  %v7716_v52 = vld [vmem:[#allocation5 + $0xfd8] sm:$0xff]  ;;  %v7697_v6 = vld [vmem:[#allocation5 + $0xf40] sm:$0xff] }
 0x1d7   :  { %5040 = vmatpush.bf16.msra.mxu0 %v7662_v53  ;;  %v7705_v7 = vld [vmem:[#allocation5 + $0xf80] sm:$0xff]  ;;  %v1173_v12 = vld [vmem:[#allocation1 + $0x3f] sm:$0xff] }
 0x1d8   :  { %5053 = vmatpush.bf16.msra.mxu1 %v7670_v54 }
 0x1d9   :  { %5066 = vmatpush.bf16.msra.mxu2 %v7678_v55 }
 0x1da   :  { %5079 = vmatpush.bf16.msra.mxu3 %v7686_v56 }
 0x1db   :  { %5041 = vmatpush.bf16.msra.mxu0 %v7661_v59  ;;  %v4815_v19 = vpop.f32.mrf.mxu2  ;;  %v7699_v59 = vld [vmem:[#allocation5 + $0xf50] sm:$0xff] }
 0x1dc   :  { %5054 = vmatpush.bf16.msra.mxu1 %v7669_v60  ;;  %v4828_v20 = vpop.f32.mrf.mxu3 }
 0x1dd   :  { %5067 = vmatpush.bf16.msra.mxu2 %v7677_v62  ;;  %v7715_v62 = vld [vmem:[#allocation5 + $0xfd0] sm:$0xff] }
 0x1de   :  { %5080 = vmatpush.bf16.msra.mxu3 %v7685_v63  ;;  %v7690_v63 = vld [vmem:[#allocation5 + $0xf08] sm:$0xff] }
 0x1df   :  { %5042 = vmatpush.bf16.msra.mxu0 %v7660_v1  ;;  %v7706_v1 = vld [vmem:[#allocation5 + $0xf88] sm:$0xff] }
 0x1e0   :  { %5055 = vmatpush.bf16.msra.mxu1 %v7668_v2  ;;  %v7714_v2 = vld [vmem:[#allocation5 + $0xfc8] sm:$0xff] }
 0x1e1   :  { %5068 = vmatpush.bf16.msra.mxu2 %v7676_v3 }
 0x1e2   :  { %5081 = vmatpush.bf16.msra.mxu3 %v7684_v4 }
 0x1e3   :  { %5043 = vmatpush.bf16.msra.mxu0 %v7659_v10  ;;  %v1171_v10 = vld [vmem:[#allocation1 + $0x2d] sm:$0xff] }
 0x1e4   :  { %5056 = vmatpush.bf16.msra.mxu1 %v7667_v11  ;;  %v1172_v11 = vld [vmem:[#allocation1 + $0x36] sm:$0xff] }
 0x1e5   :  { %5069 = vmatpush.bf16.msra.mxu2 %v7675_v13 }
 0x1e6   :  { %5082 = vmatpush.bf16.msra.mxu3 %v7683_v14 }
 0x1e7   :  { %5044 = vmatpush.bf16.msra.mxu0 %v7658_v15 }
 0x1e8   :  { %5057 = vmatpush.bf16.msra.mxu1 %v7666_v16 }
 0x1e9   :  { %5070 = vmatpush.bf16.msra.mxu2 %v7674_v17 }
 0x1ea   :  { %5083 = vmatpush.bf16.msra.mxu3 %v7682_v18 }
 0x1eb   :  { %5045 = vmatpush.bf16.msra.mxu0 %v7657_v21  ;;  %v4839_v41 = vpop.f32.mrf.mxu0 }
 0x1ec   :  { %5058 = vmatpush.bf16.msra.mxu1 %v7665_v22  ;;  %v4840_v42 = vadd.f32 %v4839_v41, %v4827_v9  ;;  %v4852_v45 = vpop.f32.mrf.mxu1  ;;  %v1170_v9 = vld [vmem:[#allocation1 + $0x24] sm:$0xff] }
 0x1ed   :  { %5071 = vmatpush.bf16.msra.mxu2 %v7673_v23 }
 0x1ee   :  { %5084 = vmatpush.bf16.msra.mxu3 %v7681_v24  ;;  %5046 = vmatmul.bf16.vlgmr.msra.gmra.mxu0 %v1166_v29  ;;  %v4853_v48 = vadd.f32 %v4852_v45, %v4840_v42 }
 0x1ef   :  { %5090 = vmatpush.bf16.msrb.mxu0 %v7696_v25  ;;  %5059 = vmatmul.bf16.vlgmr.msra.gmra.mxu1 %v1167_v31 }
 0x1f0   :  { %5103 = vmatpush.bf16.msrb.mxu1 %v7704_v26  ;;  %5072 = vmatmul.bf16.vlgmr.msra.gmra.mxu2 %v1168_v30 }
 0x1f1   :  { %5116 = vmatpush.bf16.msrb.mxu2 %v7712_v27  ;;  %5085 = vmatmul.bf16.vlgmr.msra.gmra.mxu3 %v1169_v32 }
 0x1f2   :  { %5129 = vmatpush.bf16.msrb.mxu3 %v7720_v28 }
 0x1f3   :  { %5091 = vmatpush.bf16.msrb.mxu0 %v7695_v33  ;;  %v4865_v53 = vpop.f32.mrf.mxu2  ;;  %v4841_v56 = vpop.f32.mrf.mxu0 }
 0x1f4   :  { %5104 = vmatpush.bf16.msrb.mxu1 %v7703_v34  ;;  %v4866_v54 = vadd.f32 %v4865_v53, %v4853_v48  ;;  %v4878_v55 = vpop.f32.mrf.mxu3  ;;  %v4854_v60 = vpop.f32.mrf.mxu1 }
 0x1f5   :  { %5117 = vmatpush.bf16.msrb.mxu2 %v7711_v35 }
 0x1f6   :  { %5130 = vmatpush.bf16.msrb.mxu3 %v7719_v36  ;;  %v4879_v57 = vadd.f32 %v4878_v55, %v4866_v54 }
 0x1f7   :  { %5092 = vmatpush.bf16.msrb.mxu0 %v7694_v37 }
 0x1f8   :  { %5105 = vmatpush.bf16.msrb.mxu1 %v7702_v38 }
 0x1f9   :  { %5118 = vmatpush.bf16.msrb.mxu2 %v7710_v39 }
 0x1fa   :  { %5131 = vmatpush.bf16.msrb.mxu3 %v7718_v40 }
 0x1fb   :  { %5093 = vmatpush.bf16.msrb.mxu0 %v7693_v43  ;;  %v4867_v3 = vpop.f32.mrf.mxu2 }
 0x1fc   :  { %5106 = vmatpush.bf16.msrb.mxu1 %v7701_v44  ;;  %v4880_v4 = vpop.f32.mrf.mxu3 }
 0x1fd   :  { %5119 = vmatpush.bf16.msrb.mxu2 %v7709_v46 }
 0x1fe   :  { %5132 = vmatpush.bf16.msrb.mxu3 %v7717_v47 }
 0x1ff   :  { %5094 = vmatpush.bf16.msrb.mxu0 %v7692_v49 }
 0x200   :  { %5107 = vmatpush.bf16.msrb.mxu1 %v7700_v50 }
 0x201   :  { %5120 = vmatpush.bf16.msrb.mxu2 %v7708_v51 }
 0x202   :  { %5133 = vmatpush.bf16.msrb.mxu3 %v7716_v52 }
 0x203   :  { %5095 = vmatpush.bf16.msrb.mxu0 %v7691_v58 }
 0x204   :  { %5108 = vmatpush.bf16.msrb.mxu1 %v7699_v59 }
 0x205   :  { %5121 = vmatpush.bf16.msrb.mxu2 %v7707_v61 }
 0x206   :  { %5134 = vmatpush.bf16.msrb.mxu3 %v7715_v62 }
 0x207   :  { %5096 = vmatpush.bf16.msrb.mxu0 %v7690_v63 }
 0x208   :  { %5109 = vmatpush.bf16.msrb.mxu1 %v7698_v0 }
 0x209   :  { %5122 = vmatpush.bf16.msrb.mxu2 %v7706_v1 }
 0x20a   :  { %5135 = vmatpush.bf16.msrb.mxu3 %v7714_v2 }
 0x20b   :  { %5097 = vmatpush.bf16.msrb.mxu0 %v7689_v5  ;;  %v4891_v13 = vpop.f32.mrf.mxu0 }
 0x20c   :  { %5110 = vmatpush.bf16.msrb.mxu1 %v7697_v6  ;;  %v4892_v14 = vadd.f32 %v4891_v13, %v4879_v57  ;;  %v4904_v15 = vpop.f32.mrf.mxu1 }
 0x20d   :  { %5123 = vmatpush.bf16.msrb.mxu2 %v7705_v7 }
 0x20e   :  { %5136 = vmatpush.bf16.msrb.mxu3 %v7713_v8  ;;  %5098 = vmatmul.bf16.vlgmr.msrb.gmra.mxu0 %v1170_v9  ;;  %v4905_v16 = vadd.f32 %v4904_v15, %v4892_v14 }
 0x20f   :  { %5111 = vmatmul.bf16.vlgmr.msrb.gmra.mxu1 %v1171_v10 }
 0x210   :  { %5124 = vmatmul.bf16.vlgmr.msrb.gmra.mxu2 %v1172_v11 }
 0x211   :  { %5137 = vmatmul.bf16.vlgmr.msrb.gmra.mxu3 %v1173_v12 }
 0x213   :  { %v4917_v17 = vpop.f32.mrf.mxu2  ;;  %v4893_v20 = vpop.f32.mrf.mxu0 }
 0x214   :  { %v4918_v18 = vadd.f32 %v4917_v17, %v4905_v16  ;;  %v4930_v19 = vpop.f32.mrf.mxu3  ;;  %v4906_v22 = vpop.f32.mrf.mxu1 }
 0x216   :  { %v4931_v21 = vadd.f32 %v4930_v19, %v4918_v18 }
 0x21b   :  { %v4919_v23 = vpop.f32.mrf.mxu2 }
 0x21c   :  { %v4932_v24 = vpop.f32.mrf.mxu3 }
 0x22b   :  { %v4943_v25 = vpop.f32.mrf.mxu0 }
 0x22c   :  { %v4944_v26 = vadd.f32 %v4943_v25, %v4931_v21  ;;  %v4956_v27 = vpop.f32.mrf.mxu1 }
 0x22e   :  { %v4957_v28 = vadd.f32 %v4956_v27, %v4944_v26 }
 0x233   :  { %v4969_v29 = vpop.f32.mrf.mxu2  ;;  %v4945_v32 = vpop.f32.mrf.mxu0 }
 0x234   :  { %v4970_v30 = vadd.f32 %v4969_v29, %v4957_v28  ;;  %v4982_v31 = vpop.f32.mrf.mxu3  ;;  %v4958_v34 = vpop.f32.mrf.mxu1 }
 0x236   :  { %v4983_v33 = vadd.f32 %v4982_v31, %v4970_v30 }
 0x23b   :  { %v4971_v35 = vpop.f32.mrf.mxu2 }
 0x23c   :  { %v4984_v36 = vpop.f32.mrf.mxu3 }
 0x24b   :  { %v4995_v37 = vpop.f32.mrf.mxu0 }
 0x24c   :  { %v5008_v38 = vpop.f32.mrf.mxu1  ;;  %v4996_v48 = vadd.f32 %v4995_v37, %v4983_v33 }
 0x24e   :  { %v5009_v52 = vadd.f32 %v5008_v38, %v4996_v48 }
 0x253   :  { %v5021_v39 = vpop.f32.mrf.mxu2  ;;  %v4997_v41 = vpop.f32.mrf.mxu0 }
 0x254   :  { %v5034_v40 = vpop.f32.mrf.mxu3  ;;  %v5010_v42 = vpop.f32.mrf.mxu1  ;;  %v5022_v53 = vadd.f32 %v5021_v39, %v5009_v52 }
 0x256   :  { %v5035_v56 = vadd.f32 %v5034_v40, %v5022_v53 }
 0x25b   :  { %v5023_v43 = vpop.f32.mrf.mxu2 }
 0x25c   :  { %v5036_v44 = vpop.f32.mrf.mxu3 }
 0x26b   :  { %v5047_v45 = vpop.f32.mrf.mxu0 }
 0x26c   :  { %v5060_v46 = vpop.f32.mrf.mxu1  ;;  %v5048_v57 = vadd.f32 %v5047_v45, %v5035_v56 }
 0x26e   :  { %v5061_v58 = vadd.f32 %v5060_v46, %v5048_v57 }
 0x273   :  { %v5073_v47 = vpop.f32.mrf.mxu2  ;;  %v5049_v50 = vpop.f32.mrf.mxu0 }
 0x274   :  { %v5086_v49 = vpop.f32.mrf.mxu3  ;;  %v5062_v51 = vpop.f32.mrf.mxu1  ;;  %v5074_v59 = vadd.f32 %v5073_v47, %v5061_v58 }
 0x276   :  { %v5087_v60 = vadd.f32 %v5086_v49, %v5074_v59 }
 0x27b   :  { %v5075_v54 = vpop.f32.mrf.mxu2 }
 0x27c   :  { %v5088_v55 = vpop.f32.mrf.mxu3 }
 0x28b   :  { %v5099_v61 = vpop.f32.mrf.mxu0 }
 0x28c   :  { %v5112_v62 = vpop.f32.mrf.mxu1  ;;  %v5100_v63 = vadd.f32 %v5099_v61, %v5087_v60 }
 0x28e   :  { %v5113_v0 = vadd.f32 %v5112_v62, %v5100_v63 }
 0x293   :  { %v5125_v1 = vpop.f32.mrf.mxu2  ;;  %v5101_v4 = vpop.f32.mrf.mxu0 }
 0x294   :  { %v5138_v2 = vpop.f32.mrf.mxu3  ;;  %v5126_v3 = vadd.f32 %v5125_v1, %v5113_v0  ;;  %v5114_v5 = vpop.f32.mrf.mxu1 }
 0x296   :  { %v5139_v6 = vadd.f32 %v5138_v2, %v5126_v3 }
 0x298   :  { %5142 = vst [vmem:[#allocation8] sm:$0x3] %v5139_v6 }
 0x299   :  { %5153 = dma.vmem_to_hbm [thread:$0]  %s5149_s2, 32, %s5151_s30, [#allocation4]  }
 0x29b   :  { %v5127_v7 = vpop.f32.mrf.mxu2 }
 0x29c   :  { %v5140_v8 = vpop.f32.mrf.mxu3 }
 0x29d   :  { %7828 = dma.done.wait [#allocation4], 32  }
 0x29e   :  { %7829 = vsyncadd [#allocation4], 4294967264 }
 0x29f   :  { %5158 = vsyncpa [#allocation3], 1 }
 0x2a0   :  { %5159 = vsyncpa [#allocation6], 1 }
 0x2a1   :  { %5160 = vsyncpa [#allocation4], 1 }

</bundles_post_ra>
